<compile_context>
chip_gen: v7x
topology: tpu7x:2x2x1
jax: 0.10.0
libtpu: 0.0.40
codegen_flags: <defaults>
</compile_context>

<pallas_src>
import jax
import jax.numpy as jnp
from jax.experimental import pallas as pl
from jax.experimental.pallas import tpu as pltpu

# LeakyReLU slope inside net_rho (nn.LeakyReLU() default)
_MLP_NEG_SLOPE = 0.01
# neg_slope argument of forward() (default 0.0 -> plain relu on tau)
_TAU_NEG_SLOPE = 0.0
# eval-mode BatchNorm with fresh running stats (plain Python float -> not a captured tracer)
_BN_SCALE = (1.0 + 1e-5) ** -0.5
_EPS = 1e-6


def _round_up(x, m):
    return ((x + m - 1) // m) * m


def _pick_tile(extent, unit, max_tile, min_tile):
    """Choose (tile, padded_extent) minimizing padding.

    Prefers the full (unit-rounded) extent if it fits in max_tile, otherwise the largest
    multiple-of-`unit` divisor of the rounded extent <= max_tile (zero extra padding).
    Falls back to max_tile + padding only if that divisor would be degenerately small.
    """
    padded = _round_up(extent, unit)
    if padded <= max_tile:
        return padded, padded
    best = unit
    f = 1
    while unit * f <= max_tile:
        if padded % (unit * f) == 0:
            best = unit * f
        f += 1
    if best >= min_tile:
        return best, padded
    return max_tile, _round_up(extent, max_tile)


def _vmem_limit_bytes(tile_n, tile_g, Dz, N1p, N2p):
    """Shape-derived scoped-VMEM cap (~2x the double-buffered per-step footprint)."""
    def tb(r, c):
        return _round_up(r, 8) * _round_up(c, 128) * 4
    per_step = (tb(tile_n, 1) + tb(tile_n, Dz)             # t, z tiles
                + tb(Dz, N1p) + tb(1, N1p)                 # fc1
                + tb(N1p, N2p) + tb(1, N2p)                # fc2
                + tb(N2p, tile_g) + tb(12, tile_g)         # fc_out1 weight, packed gene rows
                + 4 * tb(tile_n, tile_g))                  # four outputs
    total = 2 * per_step + tb(tile_n, N2p)                 # double-buffered I/O + h2 scratch
    return int(min(max(2 * total, 16 * 1024 * 1024), 40 * 1024 * 1024))


# --------------------------------------------------------------------------------------
# Fused kernel: net_rho trunk (cached in VMEM scratch per batch tile)
#               + fc_out1 + sigmoid + pred_su + velocities
# --------------------------------------------------------------------------------------
def _decoder_kernel(
    # inputs
    t_ref, z_ref, w1_ref, b1_ref, w2_ref, b2_ref, wout_ref, gene_ref,
    # outputs
    uhat_ref, shat_ref, vu_ref, vs_ref,
    # scratch
    h2_ref,
):
    # Trunk: recompute only when a new batch tile starts. The gene axis is the inner,
    # sequential ("arbitrary") grid axis, so the scratch stays valid across gene tiles.
    @pl.when(pl.program_id(1) == 0)
    def _():
        h1 = jnp.dot(z_ref[...], w1_ref[...],
                     preferred_element_type=jnp.float32) + b1_ref[...]
        h1 = h1 * _BN_SCALE                                  # bn1 (eval, fresh stats)
        h1 = jnp.where(h1 > 0, h1, _MLP_NEG_SLOPE * h1)      # LeakyReLU  (dpt1 = identity)
        h2 = jnp.dot(h1, w2_ref[...],
                     preferred_element_type=jnp.float32) + b2_ref[...]
        h2 = h2 * _BN_SCALE                                  # bn2 (eval, fresh stats)
        h2_ref[...] = jnp.where(h2 > 0, h2, _MLP_NEG_SLOPE * h2)

    gp = gene_ref[...]              # (12, tile_g) packed per-gene rows (single DMA)
    bout = gp[0:1, :]
    alpha = gp[1:2, :]              # exp(self.alpha)
    beta = gp[2:3, :]               # exp(self.beta)
    gamma = gp[3:4, :]              # exp(self.gamma)
    scaling = gp[4:5, :]            # exp(self.scaling)
    ton = gp[5:6, :]                # exp(self.ton)
    u0 = gp[6:7, :]                 # exp(self.u0)/exp(self.scaling)
    s0 = gp[7:8, :]                 # exp(self.s0)
    inv_beta = gp[8:9, :]
    inv_gamma = gp[9:10, :]
    inv_gb = gp[10:11, :]           # 1/(gamma - beta + eps)
    unstab = gp[11:12, :]           # 1.0 where |gamma-beta| < eps else 0.0

    logits = jnp.dot(h2_ref[...], wout_ref[...],
                     preferred_element_type=jnp.float32) + bout        # (tn, tg)
    rho = 0.5 * (jnp.tanh(0.5 * logits) + 1.0)              # sigmoid via tanh (1 EUP push)

    a = rho * alpha                                          # module: alpha = exp(alpha)*rho
    dt = t_ref[...] - ton                                    # (tn,1) - (1,tg) -> (tn,tg)
    tau = jnp.where(dt > 0, dt, _TAU_NEG_SLOPE * dt)         # F.leaky_relu(t - ton.exp(), 0.0)

    expb = jnp.exp(-beta * tau)
    expg = jnp.exp(-gamma * tau)

    uhat = u0 * expb + (a * inv_beta) * (1.0 - expb)
    amb = a - beta * u0
    last_stable = amb * inv_gb * (expg - expb)
    last_unstab = -amb * (tau * expb)                        # analytic limit gamma -> beta
    shat = (s0 * expg + (a * inv_gamma) * (1.0 - expg)
            + last_stable + unstab * (last_unstab - last_stable))

    u_cl = jnp.maximum(uhat, 0.0)                            # == Uhat / scaling
    s_cl = jnp.maximum(shat, 0.0)                            # == Shat
    uhat_ref[...] = u_cl * scaling                           # relu(Uhat) (already >= 0)
    shat_ref[...] = s_cl                                     # relu(Shat)
    vu_ref[...] = a - beta * u_cl                            # alpha - beta*Uhat/scaling
    vs_ref[...] = beta * u_cl - gamma * s_cl                 # beta*Uhat/scaling - gamma*Shat


# --------------------------------------------------------------------------------------
# Wrapper
# --------------------------------------------------------------------------------------
def decoder_forward(t, z, params, *, max_tile_n=512, max_tile_g=512):
    """Pallas forward for the decoder (eval mode). params holds raw (log) parameters."""
    f32 = jnp.float32
    N, Dz = z.shape
    N1 = params["w1"].shape[1]
    N2 = params["w2"].shape[1]
    G = params["wout"].shape[1]

    N1p = _round_up(N1, 128)          # lane-dense trunk widths (zero-padded, exact)
    N2p = _round_up(N2, 128)

    tile_n, Np = _pick_tile(N, 8, max_tile_n, 32)
    tile_g, Gp = _pick_tile(G, 128, max_tile_g, 128)
    n_bt = Np // tile_n
    n_gt = Gp // tile_g

    def pad_to(x, rows, cols, value=0.0):
        pr, pc = rows - x.shape[0], cols - x.shape[1]
        if pr or pc:
            x = jnp.pad(x, ((0, pr), (0, pc)), constant_values=value)
        return x

    t_p = pad_to(t.astype(f32), Np, 1)
    z_p = pad_to(z.astype(f32), Np, Dz)

    # Zero-padded trunk weights: padded hidden units stay exactly 0 through the bn scale
    # and LeakyReLU, and the zero-padded wout rows contribute nothing to the logits.
    w1_p = pad_to(params["w1"].astype(f32), Dz, N1p)
    b1_p = pad_to(params["b1"].reshape(1, -1).astype(f32), 1, N1p)
    w2_p = pad_to(params["w2"].astype(f32), N1p, N2p)
    b2_p = pad_to(params["b2"].reshape(1, -1).astype(f32), 1, N2p)
    wout_p = pad_to(params["wout"].astype(f32), N2p, Gp)

    # Per-gene derived parameters: exps + reciprocals computed ONCE here, packed together
    # with the fc_out1 bias into one (12, Gp) array (single DMA per grid step). Padded
    # gene columns (if any) get benign values and are sliced off at the end.
    row = lambda v: v.reshape(1, -1).astype(f32)
    alpha = jnp.exp(row(params["alpha"]))
    beta = jnp.exp(row(params["beta"]))
    gamma = jnp.exp(row(params["gamma"]))
    scaling = jnp.exp(row(params["scaling"]))
    ton = jnp.exp(row(params["ton"]))
    u0 = jnp.exp(row(params["u0"])) / scaling
    s0 = jnp.exp(row(params["s0"]))
    inv_beta = 1.0 / beta
    inv_gamma = 1.0 / gamma
    inv_gb = 1.0 / (gamma - beta + _EPS)
    unstab = (jnp.abs(gamma - beta) < _EPS).astype(f32)

    pc = lambda x, v: pad_to(x, 1, Gp, v)
    gene_rows = jnp.concatenate([
        pc(params["bout"].reshape(1, -1).astype(f32), 0.0),
        pc(alpha, 0.0), pc(beta, 1.0), pc(gamma, 2.0), pc(scaling, 1.0),
        pc(ton, 0.0), pc(u0, 0.0), pc(s0, 0.0),
        pc(inv_beta, 1.0), pc(inv_gamma, 0.5), pc(inv_gb, 1.0), pc(unstab, 0.0),
    ], axis=0)                                                           # (12, Gp)

    const2 = lambda shape: pl.BlockSpec(shape, lambda i, j: (0, 0))
    in_specs = [
        pl.BlockSpec((tile_n, 1), lambda i, j: (i, 0)),      # t batch tile
        pl.BlockSpec((tile_n, Dz), lambda i, j: (i, 0)),     # z batch tile
        const2((Dz, N1p)), const2((1, N1p)),                 # fc1
        const2((N1p, N2p)), const2((1, N2p)),                # fc2
        pl.BlockSpec((N2p, tile_g), lambda i, j: (0, j)),    # fc_out1 weight
        pl.BlockSpec((12, tile_g), lambda i, j: (0, j)),     # packed gene params
    ]
    out_spec = pl.BlockSpec((tile_n, tile_g), lambda i, j: (i, j))
    out_shape = tuple(jax.ShapeDtypeStruct((Np, Gp), f32) for _ in range(4))

    outs = pl.pallas_call(
        _decoder_kernel,
        out_shape=out_shape,
        grid_spec=pltpu.PrefetchScalarGridSpec(
            num_scalar_prefetch=0,
            grid=(n_bt, n_gt),
            in_specs=in_specs,
            out_specs=[out_spec] * 4,
            scratch_shapes=[pltpu.VMEM((tile_n, N2p), f32)],   # h2 cache per batch tile
        ),
        compiler_params=pltpu.CompilerParams(
            # batch axis parallel (megacore on v7x); gene axis sequential so the h2
            # scratch carried across gene tiles stays valid.
            dimension_semantics=("parallel", "arbitrary"),
            vmem_limit_bytes=_vmem_limit_bytes(tile_n, tile_g, Dz, N1p, N2p),
        ),
    )(t_p, z_p, w1_p, b1_p, w2_p, b2_p, wout_p, gene_rows)

    return tuple(o[:N, :G] for o in outs)


# --------------------------------------------------------------------------------------
# Pure-JAX reference mirroring the PyTorch forward (eval-mode BN/dropout)
# --------------------------------------------------------------------------------------
def _reference_forward(t, z, p):
    h1 = z @ p["w1"] + p["b1"]
    h1 = h1 * _BN_SCALE
    h1 = jnp.where(h1 > 0, h1, _MLP_NEG_SLOPE * h1)
    h2 = h1 @ p["w2"] + p["b2"]
    h2 = h2 * _BN_SCALE
    h2 = jnp.where(h2 > 0, h2, _MLP_NEG_SLOPE * h2)
    rho = jax.nn.sigmoid(h2 @ p["wout"] + p["bout"])

    beta = jnp.exp(p["beta"])[None, :]
    gamma = jnp.exp(p["gamma"])[None, :]
    scaling = jnp.exp(p["scaling"])[None, :]
    ton = jnp.exp(p["ton"])[None, :]
    u0 = jnp.exp(p["u0"])[None, :] / scaling
    s0 = jnp.exp(p["s0"])[None, :]
    alpha = jnp.exp(p["alpha"])[None, :] * rho               # module: alpha = exp(alpha)*rho

    dt = t - ton
    tau = jnp.where(dt > 0, dt, _TAU_NEG_SLOPE * dt)
    expb = jnp.exp(-beta * tau)
    expg = jnp.exp(-gamma * tau)
    uhat = u0 * expb + alpha / beta * (1.0 - expb)
    unstable = jnp.abs(gamma - beta) < _EPS
    shat = (s0 * expg + alpha / gamma * (1.0 - expg)
            + jnp.where(unstable,
                        (beta * u0 - alpha) * tau * expb,
                        (alpha - beta * u0) / (gamma - beta + _EPS) * (expg - expb)))
    Uhat = jnp.maximum(uhat, 0.0) * scaling
    Shat = jnp.maximum(shat, 0.0)
    vu = alpha - beta * Uhat / scaling
    vs = beta * Uhat / scaling - gamma * Shat
    return jnp.maximum(Uhat, 0.0), jnp.maximum(Shat, 0.0), vu, vs


def _make_params(key, *, Dz, N1, N2, G):
    """Deterministic synthetic parameters matching decoder.__init__ shapes (raw log params)."""
    ks = jax.random.split(key, 8)

    def xavier_uniform(k, fi, fo):
        bound = (6.0 / (fi + fo)) ** 0.5
        return jax.random.uniform(k, (fi, fo), jnp.float32, -bound, bound)

    def xavier_normal(k, fi, fo):
        std = (2.0 / (fi + fo)) ** 0.5
        return jax.random.normal(k, (fi, fo), jnp.float32) * std

    w1 = xavier_uniform(ks[0], Dz, N1)          # net_rho fc1 / fc2: xavier_uniform, zero bias
    w2 = xavier_uniform(ks[1], N1, N2)
    wout = xavier_normal(ks[2], N2, G)          # fc_out1: xavier_normal, zero bias
    b1 = jnp.zeros((1, N1), jnp.float32)
    b2 = jnp.zeros((1, N2), jnp.float32)
    bout = jnp.zeros((1, G), jnp.float32)

    alpha = 0.1 * jax.random.normal(ks[3], (G,), jnp.float32)       # log-rates
    beta = 0.1 * jax.random.normal(ks[4], (G,), jnp.float32)
    gamma = 0.5 + 0.1 * jax.random.normal(ks[5], (G,), jnp.float32)
    scaling = 0.1 * jax.random.normal(ks[6], (G,), jnp.float32)     # log-scaling
    ton = jnp.full((G,), -10.0, jnp.float32)                        # log switch-on time
    u0 = jnp.full((G,), -10.0, jnp.float32)                         # init_type None
    s0 = jnp.full((G,), -10.0, jnp.float32)

    return dict(w1=w1, b1=b1, w2=w2, b2=b2, wout=wout, bout=bout,
                alpha=alpha, beta=beta, gamma=gamma,
                scaling=scaling, ton=ton, u0=u0, s0=s0)


if __name__ == "__main__":
    # small shapes consistent with the module (dim_z latent, N1/N2 hidden, G genes);
    # N and G intentionally NOT 128-aligned -- the divisor-based tiling chooses
    # tile_n=40, tile_g=128 (grid 5x3) with ZERO padded rows/columns, exercising the
    # multi-tile grid and the h2 scratch carried across gene tiles.
    N, Dz, N1, N2, G = 200, 16, 32, 64, 384
    TMAX = 20.0

    key = jax.random.PRNGKey(0)
    k_t, k_z, k_p = jax.random.split(key, 3)
    t = jax.random.uniform(k_t, (N, 1), jnp.float32, 0.0, TMAX)
    z = jax.random.normal(k_z, (N, Dz), jnp.float32)
    params = _make_params(k_p, Dz=Dz, N1=N1, N2=N2, G=G)

    Uhat, Shat, vu, vs = jax.block_until_ready(
        decoder_forward(t, z, params, max_tile_n=128, max_tile_g=256)
    )

    # sanity check against the pure-JAX reference
    ref = _reference_forward(t, z, params)
    for got, want in zip((Uhat, Shat, vu, vs), ref):
        assert got.shape == (N, G)
        tol = 1e-3 * (1.0 + float(jnp.max(jnp.abs(want))))
        err = float(jnp.max(jnp.abs(got - want)))
        assert err < tol, f"mismatch vs reference: {err} >= {tol}"

    print("KERNEL_OK")
</pallas_src>

<mosaic_0001>
module attributes {stable_mosaic.version = 11 : i64} {
  func.func @_decoder_kernel(%arg0: i32, %arg1: i32, %arg2: memref<40x1xf32, #tpu.memory_space<vmem>>, %arg3: memref<40x16xf32, #tpu.memory_space<vmem>>, %arg4: memref<16x128xf32, #tpu.memory_space<vmem>>, %arg5: memref<1x128xf32, #tpu.memory_space<vmem>>, %arg6: memref<128x128xf32, #tpu.memory_space<vmem>>, %arg7: memref<1x128xf32, #tpu.memory_space<vmem>>, %arg8: memref<128x128xf32, #tpu.memory_space<vmem>>, %arg9: memref<12x128xf32, #tpu.memory_space<vmem>>, %arg10: memref<40x128xf32, #tpu.memory_space<vmem>>, %arg11: memref<40x128xf32, #tpu.memory_space<vmem>>, %arg12: memref<40x128xf32, #tpu.memory_space<vmem>>, %arg13: memref<40x128xf32, #tpu.memory_space<vmem>>, %arg14: memref<40x128xf32, #tpu.memory_space<vmem>>) attributes {dimension_semantics = [#tpu.dimension_semantics<parallel>, #tpu.dimension_semantics<arbitrary>], iteration_bounds = array<i64: 5, 3>, scalar_prefetch = 0 : i64, scratch_operands = 1 : i64, tpu.core_type = #tpu.core_type<tc>, window_params = [{transform_indices = @transform_0, window_bounds = array<i64: 40, 1>}, {transform_indices = @transform_1, window_bounds = array<i64: 40, 16>}, {pipeline_mode = #tpu.pipeline_mode<synchronous>, transform_indices = @transform_2, window_bounds = array<i64: 16, 128>}, {pipeline_mode = #tpu.pipeline_mode<synchronous>, transform_indices = @transform_3, window_bounds = array<i64: 1, 128>}, {pipeline_mode = #tpu.pipeline_mode<synchronous>, transform_indices = @transform_4, window_bounds = array<i64: 128, 128>}, {pipeline_mode = #tpu.pipeline_mode<synchronous>, transform_indices = @transform_5, window_bounds = array<i64: 1, 128>}, {transform_indices = @transform_6, window_bounds = array<i64: 128, 128>}, {transform_indices = @transform_7, window_bounds = array<i64: 12, 128>}, {transform_indices = @transform_8, window_bounds = array<i64: 40, 128>}, {transform_indices = @transform_9, window_bounds = array<i64: 40, 128>}, {transform_indices = @transform_10, window_bounds = array<i64: 40, 128>}, {transform_indices = @transform_11, window_bounds = array<i64: 40, 128>}]} {
    %c0_i32 = arith.constant 0 : i32
    %0 = arith.cmpi eq, %arg1, %c0_i32 : i32
    %1 = arith.extui %0 : i1 to i32
    %c0_i32_0 = arith.constant 0 : i32
    %2 = arith.cmpi ne, %1, %c0_i32_0 : i32
    scf.if %2 {
      %c0_28 = arith.constant 0 : index
      %c0_29 = arith.constant 0 : index
      %99 = vector.load %arg3[%c0_28, %c0_29] : memref<40x16xf32, #tpu.memory_space<vmem>>, vector<40x16xf32>
      %c0_30 = arith.constant 0 : index
      %c0_31 = arith.constant 0 : index
      %100 = vector.load %arg4[%c0_30, %c0_31] : memref<16x128xf32, #tpu.memory_space<vmem>>, vector<16x128xf32>
      %cst_32 = arith.constant dense<0.000000e+00> : vector<40x128xf32>
      %101 = tpu.matmul %99, %100, %cst_32 {dimension_numbers = #tpu.dot_dimension_numbers<[1], [0], [0], [1], [0, 0, 1, 1], [], []>} : vector<40x16xf32>, vector<16x128xf32>, vector<40x128xf32> -> vector<40x128xf32>
      %c0_33 = arith.constant 0 : index
      %c0_34 = arith.constant 0 : index
      %102 = vector.load %arg5[%c0_33, %c0_34] : memref<1x128xf32, #tpu.memory_space<vmem>>, vector<1x128xf32>
      %103 = vector.broadcast %102 : vector<1x128xf32> to vector<40x128xf32>
      %104 = arith.addf %101, %103 : vector<40x128xf32>
      %cst_35 = arith.constant 0.999994993 : f32
      %105 = vector.broadcast %cst_35 : f32 to vector<40x128xf32>
      %106 = arith.mulf %104, %105 : vector<40x128xf32>
      %cst_36 = arith.constant 0.000000e+00 : f32
      %107 = vector.broadcast %cst_36 : f32 to vector<40x128xf32>
      %108 = arith.cmpf ogt, %106, %107 : vector<40x128xf32>
      %cst_37 = arith.constant 0.00999999977 : f32
      %109 = vector.broadcast %cst_37 : f32 to vector<40x128xf32>
      %110 = arith.mulf %109, %106 : vector<40x128xf32>
      %111 = arith.select %108, %106, %110 : vector<40x128xi1>, vector<40x128xf32>
      %c0_38 = arith.constant 0 : index
      %c0_39 = arith.constant 0 : index
      %112 = vector.load %arg6[%c0_38, %c0_39] : memref<128x128xf32, #tpu.memory_space<vmem>>, vector<128x128xf32>
      %cst_40 = arith.constant dense<0.000000e+00> : vector<40x128xf32>
      %113 = tpu.matmul %111, %112, %cst_40 {dimension_numbers = #tpu.dot_dimension_numbers<[1], [0], [0], [1], [0, 0, 1, 1], [], []>} : vector<40x128xf32>, vector<128x128xf32>, vector<40x128xf32> -> vector<40x128xf32>
      %c0_41 = arith.constant 0 : index
      %c0_42 = arith.constant 0 : index
      %114 = vector.load %arg7[%c0_41, %c0_42] : memref<1x128xf32, #tpu.memory_space<vmem>>, vector<1x128xf32>
      %115 = vector.broadcast %114 : vector<1x128xf32> to vector<40x128xf32>
      %116 = arith.addf %113, %115 : vector<40x128xf32>
      %cst_43 = arith.constant 0.999994993 : f32
      %117 = vector.broadcast %cst_43 : f32 to vector<40x128xf32>
      %118 = arith.mulf %116, %117 : vector<40x128xf32>
      %cst_44 = arith.constant 0.000000e+00 : f32
      %119 = vector.broadcast %cst_44 : f32 to vector<40x128xf32>
      %120 = arith.cmpf ogt, %118, %119 : vector<40x128xf32>
      %cst_45 = arith.constant 0.00999999977 : f32
      %121 = vector.broadcast %cst_45 : f32 to vector<40x128xf32>
      %122 = arith.mulf %121, %118 : vector<40x128xf32>
      %123 = arith.select %120, %118, %122 : vector<40x128xi1>, vector<40x128xf32>
      %c0_46 = arith.constant 0 : index
      %c0_47 = arith.constant 0 : index
      %124 = vector.load %arg14[%c0_46, %c0_47] : memref<40x128xf32, #tpu.memory_space<vmem>>, vector<40x128xf32>
      tpu.vector_store %arg14[%c0_46, %c0_47], %123 {strides = array<i32>} : memref<40x128xf32, #tpu.memory_space<vmem>>, vector<40x128xf32>,
    } else {
    }
    %c0 = arith.constant 0 : index
    %c0_1 = arith.constant 0 : index
    %3 = vector.load %arg9[%c0, %c0_1] : memref<12x128xf32, #tpu.memory_space<vmem>>, vector<12x128xf32>
    %4 = vector.extract_strided_slice %3 {offsets = [0, 0], sizes = [1, 128], strides = [1, 1]} : vector<12x128xf32> to vector<1x128xf32>
    %5 = vector.extract_strided_slice %3 {offsets = [1, 0], sizes = [1, 128], strides = [1, 1]} : vector<12x128xf32> to vector<1x128xf32>
    %6 = vector.extract_strided_slice %3 {offsets = [2, 0], sizes = [1, 128], strides = [1, 1]} : vector<12x128xf32> to vector<1x128xf32>
    %7 = vector.extract_strided_slice %3 {offsets = [3, 0], sizes = [1, 128], strides = [1, 1]} : vector<12x128xf32> to vector<1x128xf32>
    %8 = vector.extract_strided_slice %3 {offsets = [4, 0], sizes = [1, 128], strides = [1, 1]} : vector<12x128xf32> to vector<1x128xf32>
    %9 = vector.extract_strided_slice %3 {offsets = [5, 0], sizes = [1, 128], strides = [1, 1]} : vector<12x128xf32> to vector<1x128xf32>
    %10 = vector.extract_strided_slice %3 {offsets = [6, 0], sizes = [1, 128], strides = [1, 1]} : vector<12x128xf32> to vector<1x128xf32>
    %11 = vector.extract_strided_slice %3 {offsets = [7, 0], sizes = [1, 128], strides = [1, 1]} : vector<12x128xf32> to vector<1x128xf32>
    %12 = vector.extract_strided_slice %3 {offsets = [8, 0], sizes = [1, 128], strides = [1, 1]} : vector<12x128xf32> to vector<1x128xf32>
    %13 = vector.extract_strided_slice %3 {offsets = [9, 0], sizes = [1, 128], strides = [1, 1]} : vector<12x128xf32> to vector<1x128xf32>
    %14 = vector.extract_strided_slice %3 {offsets = [10, 0], sizes = [1, 128], strides = [1, 1]} : vector<12x128xf32> to vector<1x128xf32>
    %15 = vector.extract_strided_slice %3 {offsets = [11, 0], sizes = [1, 128], strides = [1, 1]} : vector<12x128xf32> to vector<1x128xf32>
    %c0_2 = arith.constant 0 : index
    %c0_3 = arith.constant 0 : index
    %16 = vector.load %arg14[%c0_2, %c0_3] : memref<40x128xf32, #tpu.memory_space<vmem>>, vector<40x128xf32>
    %c0_4 = arith.constant 0 : index
    %c0_5 = arith.constant 0 : index
    %17 = vector.load %arg8[%c0_4, %c0_5] : memref<128x128xf32, #tpu.memory_space<vmem>>, vector<128x128xf32>
    %cst = arith.constant dense<0.000000e+00> : vector<40x128xf32>
    %18 = tpu.matmul %16, %17, %cst {dimension_numbers = #tpu.dot_dimension_numbers<[1], [0], [0], [1], [0, 0, 1, 1], [], []>} : vector<40x128xf32>, vector<128x128xf32>, vector<40x128xf32> -> vector<40x128xf32>
    %19 = vector.broadcast %4 : vector<1x128xf32> to vector<40x128xf32>
    %20 = arith.addf %18, %19 : vector<40x128xf32>
    %cst_6 = arith.constant 5.000000e-01 : f32
    %21 = vector.broadcast %cst_6 : f32 to vector<40x128xf32>
    %22 = arith.mulf %21, %20 : vector<40x128xf32>
    %23 = math.tanh %22 : vector<40x128xf32>
    %cst_7 = arith.constant 1.000000e+00 : f32
    %24 = vector.broadcast %cst_7 : f32 to vector<40x128xf32>
    %25 = arith.addf %23, %24 : vector<40x128xf32>
    %cst_8 = arith.constant 5.000000e-01 : f32
    %26 = vector.broadcast %cst_8 : f32 to vector<40x128xf32>
    %27 = arith.mulf %26, %25 : vector<40x128xf32>
    %28 = vector.broadcast %5 : vector<1x128xf32> to vector<40x128xf32>
    %29 = arith.mulf %27, %28 : vector<40x128xf32>
    %c0_9 = arith.constant 0 : index
    %c0_10 = arith.constant 0 : index
    %30 = vector.load %arg2[%c0_9, %c0_10] : memref<40x1xf32, #tpu.memory_space<vmem>>, vector<40x1xf32>
    %31 = vector.broadcast %30 : vector<40x1xf32> to vector<40x128xf32>
    %32 = vector.broadcast %9 : vector<1x128xf32> to vector<40x128xf32>
    %33 = arith.subf %31, %32 : vector<40x128xf32>
    %cst_11 = arith.constant 0.000000e+00 : f32
    %34 = vector.broadcast %cst_11 : f32 to vector<40x128xf32>
    %35 = arith.cmpf ogt, %33, %34 : vector<40x128xf32>
    %cst_12 = arith.constant 0.000000e+00 : f32
    %36 = vector.broadcast %cst_12 : f32 to vector<40x128xf32>
    %37 = arith.mulf %36, %33 : vector<40x128xf32>
    %38 = arith.select %35, %33, %37 : vector<40x128xi1>, vector<40x128xf32>
    %cst_13 = arith.constant 0.000000e+00 : f32
    %39 = vector.broadcast %cst_13 : f32 to vector<1x128xf32>
    %40 = arith.subf %39, %6 : vector<1x128xf32>
    %41 = vector.broadcast %40 : vector<1x128xf32> to vector<40x128xf32>
    %42 = arith.mulf %41, %38 : vector<40x128xf32>
    %43 = math.exp %42 : vector<40x128xf32>
    %cst_14 = arith.constant 0.000000e+00 : f32
    %44 = vector.broadcast %cst_14 : f32 to vector<1x128xf32>
    %45 = arith.subf %44, %7 : vector<1x128xf32>
    %46 = vector.broadcast %45 : vector<1x128xf32> to vector<40x128xf32>
    %47 = arith.mulf %46, %38 : vector<40x128xf32>
    %48 = math.exp %47 : vector<40x128xf32>
    %49 = vector.broadcast %10 : vector<1x128xf32> to vector<40x128xf32>
    %50 = arith.mulf %49, %43 : vector<40x128xf32>
    %51 = vector.broadcast %12 : vector<1x128xf32> to vector<40x128xf32>
    %52 = arith.mulf %29, %51 : vector<40x128xf32>
    %cst_15 = arith.constant 1.000000e+00 : f32
    %53 = vector.broadcast %cst_15 : f32 to vector<40x128xf32>
    %54 = arith.subf %53, %43 : vector<40x128xf32>
    %55 = arith.mulf %52, %54 : vector<40x128xf32>
    %56 = arith.addf %50, %55 : vector<40x128xf32>
    %57 = arith.mulf %6, %10 : vector<1x128xf32>
    %58 = vector.broadcast %57 : vector<1x128xf32> to vector<40x128xf32>
    %59 = arith.subf %29, %58 : vector<40x128xf32>
    %60 = vector.broadcast %14 : vector<1x128xf32> to vector<40x128xf32>
    %61 = arith.mulf %59, %60 : vector<40x128xf32>
    %62 = arith.subf %48, %43 : vector<40x128xf32>
    %63 = arith.mulf %61, %62 : vector<40x128xf32>
    %cst_16 = arith.constant 0.000000e+00 : f32
    %64 = vector.broadcast %cst_16 : f32 to vector<40x128xf32>
    %65 = arith.subf %64, %59 : vector<40x128xf32>
    %66 = arith.mulf %38, %43 : vector<40x128xf32>
    %67 = arith.mulf %65, %66 : vector<40x128xf32>
    %68 = vector.broadcast %11 : vector<1x128xf32> to vector<40x128xf32>
    %69 = arith.mulf %68, %48 : vector<40x128xf32>
    %70 = vector.broadcast %13 : vector<1x128xf32> to vector<40x128xf32>
    %71 = arith.mulf %29, %70 : vector<40x128xf32>
    %cst_17 = arith.constant 1.000000e+00 : f32
    %72 = vector.broadcast %cst_17 : f32 to vector<40x128xf32>
    %73 = arith.subf %72, %48 : vector<40x128xf32>
    %74 = arith.mulf %71, %73 : vector<40x128xf32>
    %75 = arith.addf %69, %74 : vector<40x128xf32>
    %76 = arith.addf %75, %63 : vector<40x128xf32>
    %77 = arith.subf %67, %63 : vector<40x128xf32>
    %78 = vector.broadcast %15 : vector<1x128xf32> to vector<40x128xf32>
    %79 = arith.mulf %78, %77 : vector<40x128xf32>
    %80 = arith.addf %76, %79 : vector<40x128xf32>
    %cst_18 = arith.constant 0.000000e+00 : f32
    %81 = vector.broadcast %cst_18 : f32 to vector<40x128xf32>
    %82 = arith.maximumf %56, %81 : vector<40x128xf32>
    %cst_19 = arith.constant 0.000000e+00 : f32
    %83 = vector.broadcast %cst_19 : f32 to vector<40x128xf32>
    %84 = arith.maximumf %80, %83 : vector<40x128xf32>
    %85 = vector.broadcast %8 : vector<1x128xf32> to vector<40x128xf32>
    %86 = arith.mulf %82, %85 : vector<40x128xf32>
    %c0_20 = arith.constant 0 : index
    %c0_21 = arith.constant 0 : index
    %87 = vector.load %arg10[%c0_20, %c0_21] : memref<40x128xf32, #tpu.memory_space<vmem>>, vector<40x128xf32>
    tpu.vector_store %arg10[%c0_20, %c0_21], %86 {strides = array<i32>} : memref<40x128xf32, #tpu.memory_space<vmem>>, vector<40x128xf32>,
    %c0_22 = arith.constant 0 : index
    %c0_23 = arith.constant 0 : index
    %88 = vector.load %arg11[%c0_22, %c0_23] : memref<40x128xf32, #tpu.memory_space<vmem>>, vector<40x128xf32>
    tpu.vector_store %arg11[%c0_22, %c0_23], %84 {strides = array<i32>} : memref<40x128xf32, #tpu.memory_space<vmem>>, vector<40x128xf32>,
    %89 = vector.broadcast %6 : vector<1x128xf32> to vector<40x128xf32>
    %90 = arith.mulf %89, %82 : vector<40x128xf32>
    %91 = arith.subf %29, %90 : vector<40x128xf32>
    %c0_24 = arith.constant 0 : index
    %c0_25 = arith.constant 0 : index
    %92 = vector.load %arg12[%c0_24, %c0_25] : memref<40x128xf32, #tpu.memory_space<vmem>>, vector<40x128xf32>
    tpu.vector_store %arg12[%c0_24, %c0_25], %91 {strides = array<i32>} : memref<40x128xf32, #tpu.memory_space<vmem>>, vector<40x128xf32>,
    %93 = vector.broadcast %6 : vector<1x128xf32> to vector<40x128xf32>
    %94 = arith.mulf %93, %82 : vector<40x128xf32>
    %95 = vector.broadcast %7 : vector<1x128xf32> to vector<40x128xf32>
    %96 = arith.mulf %95, %84 : vector<40x128xf32>
    %97 = arith.subf %94, %96 : vector<40x128xf32>
    %c0_26 = arith.constant 0 : index
    %c0_27 = arith.constant 0 : index
    %98 = vector.load %arg13[%c0_26, %c0_27] : memref<40x128xf32, #tpu.memory_space<vmem>>, vector<40x128xf32>
    tpu.vector_store %arg13[%c0_26, %c0_27], %97 {strides = array<i32>} : memref<40x128xf32, #tpu.memory_space<vmem>>, vector<40x128xf32>,
    return
  }
  func.func @transform_0(%arg0: i32, %arg1: i32) -> (i32, i32) {
    %c0_i32 = arith.constant 0 : i32
    %c0_i32_0 = arith.constant 0 : i32
    return %arg0, %c0_i32 : i32, i32
  }
  func.func @transform_1(%arg0: i32, %arg1: i32) -> (i32, i32) {
    %c0_i32 = arith.constant 0 : i32
    %c0_i32_0 = arith.constant 0 : i32
    return %arg0, %c0_i32 : i32, i32
  }
  func.func @transform_2(%arg0: i32, %arg1: i32) -> (i32, i32) {
    %c0_i32 = arith.constant 0 : i32
    %c0_i32_0 = arith.constant 0 : i32
    %c0_i32_1 = arith.constant 0 : i32
    return %c0_i32, %c0_i32_0 : i32, i32
  }
  func.func @transform_3(%arg0: i32, %arg1: i32) -> (i32, i32) {
    %c0_i32 = arith.constant 0 : i32
    %c0_i32_0 = arith.constant 0 : i32
    %c0_i32_1 = arith.constant 0 : i32
    return %c0_i32, %c0_i32_0 : i32, i32
  }
  func.func @transform_4(%arg0: i32, %arg1: i32) -> (i32, i32) {
    %c0_i32 = arith.constant 0 : i32
    %c0_i32_0 = arith.constant 0 : i32
    %c0_i32_1 = arith.constant 0 : i32
    return %c0_i32, %c0_i32_0 : i32, i32
  }
  func.func @transform_5(%arg0: i32, %arg1: i32) -> (i32, i32) {
    %c0_i32 = arith.constant 0 : i32
    %c0_i32_0 = arith.constant 0 : i32
    %c0_i32_1 = arith.constant 0 : i32
    return %c0_i32, %c0_i32_0 : i32, i32
  }
  func.func @transform_6(%arg0: i32, %arg1: i32) -> (i32, i32) {
    %c0_i32 = arith.constant 0 : i32
    %c0_i32_0 = arith.constant 0 : i32
    return %c0_i32, %arg1 : i32, i32
  }
  func.func @transform_7(%arg0: i32, %arg1: i32) -> (i32, i32) {
    %c0_i32 = arith.constant 0 : i32
    %c0_i32_0 = arith.constant 0 : i32
    return %c0_i32, %arg1 : i32, i32
  }
  func.func @transform_8(%arg0: i32, %arg1: i32) -> (i32, i32) {
    %c0_i32 = arith.constant 0 : i32
    return %arg0, %arg1 : i32, i32
  }
  func.func @transform_9(%arg0: i32, %arg1: i32) -> (i32, i32) {
    %c0_i32 = arith.constant 0 : i32
    return %arg0, %arg1 : i32, i32
  }
  func.func @transform_10(%arg0: i32, %arg1: i32) -> (i32, i32) {
    %c0_i32 = arith.constant 0 : i32
    return %arg0, %arg1 : i32, i32
  }
  func.func @transform_11(%arg0: i32, %arg1: i32) -> (i32, i32) {
    %c0_i32 = arith.constant 0 : i32
    return %arg0, %arg1 : i32, i32
  }
}

</mosaic_0001>

<bundles_post_ra>
// kernel: tpu_custom_call.1
= control target key start
LH: loop header
LB: loop body
LE: loop exit
PB: predicated region body
PF: predicated region fallthrough
CT: control target
= control target key end

     0   :  { %s3208_s0 = inlined_call_operand.vmem [shape: f32[200,1], index: 0, kind: input, shape index: {}]   ;;  %s3209_s1 = inlined_call_operand.vmem [shape: f32[200,16], index: 1, kind: input, shape index: {}]   ;;  %s3210_s2 = inlined_call_operand.vmem [shape: f32[16,128], index: 2, kind: input, shape index: {}]   ;;  %s3211_s3 = inlined_call_operand.vmem [shape: f32[1,128], index: 3, kind: input, shape index: {}]   ;;  %s3212_s4 = inlined_call_operand.hbm [shape: f32[128,128], index: 4, kind: input, shape index: {}]   ;;  %s3213_s5 = inlined_call_operand.vmem [shape: f32[1,128], index: 5, kind: input, shape index: {}]   ;;  %s3214_s6 = inlined_call_operand.vmem [shape: f32[128,384], index: 6, kind: input, shape index: {}]   ;;  %s3215_s7 = inlined_call_operand.vmem [shape: f32[12,384], index: 7, kind: input, shape index: {}]   ;;  %s3216_s8 = inlined_call_operand.hbm [shape: f32[200,384], index: 8, kind: output, shape index: {0}]   ;;  %s3217_s9 = inlined_call_operand.hbm [shape: f32[200,384], index: 9, kind: output, shape index: {1}]   ;;  %s3218_s10 = inlined_call_operand.hbm [shape: f32[200,384], index: 10, kind: output, shape index: {2}]   ;;  %s3219_s11 = inlined_call_operand.hbm [shape: f32[200,384], index: 11, kind: output, shape index: {3}]  }
   0x1   :  { %3239 = sst [smem:[#allocation26_spill]] %s3208_s0 }
   0x2   :  { %3240 = sst [smem:[#allocation27_spill]] %s3209_s1 }
   0x3   :  { %3241 = sst [smem:[#allocation28_spill]] %s3212_s4 }
   0x4   :  { %3242 = sst [smem:[#allocation29_spill]] %s3214_s6 }
   0x5   :  { %3243 = sst [smem:[#allocation30_spill]] %s3216_s8 }
   0x6   :  { %3244 = sst [smem:[#allocation31_spill]] %s3217_s9 }
   0x7   :  { %3245 = sst [smem:[#allocation32_spill]] %s3218_s10 }
   0x8   :  { %3246 = sst [smem:[#allocation33_spill]] %s3219_s11 }
   0x9   :  { %17 = vsyncpa [#allocation4], 0 }
   0xa   :  { %18 = vsyncpa [#allocation5], 0 }
   0xb   :  { %20 = vsyncpa [#allocation5 + $0x1], 0 }
   0xc   :  { %21 = vsyncpa [#allocation10], 0 }
   0xd   :  { %23 = vsyncpa [#allocation10 + $0x1], 0 }
   0xe   :  { %24 = vsyncpa [#allocation13], 0 }
   0xf   :  { %26 = vsyncpa [#allocation13 + $0x1], 0  ;;  %s2445_s17 = smov 0   ;;  %s2447_s18 = smov 0  }
  0x10   :  { %s2449_s19 = smov 0   ;;  %s2451_s20 = smov 0  }
  0x11   :  { %s2453_s21 = smov 0   ;;  %s2455_s22 = smov 0  }
  0x12   :  { %s2457_s23 = smov 0   ;;  %s2459_s24 = smov 0  }
  0x13   :  { %s2461_s25 = smov 0   ;;  %s2463_s26 = smov 0  }
  0x14 LB: > { %3247 = sst [smem:[#allocation18_spill]] %s2330_s17  ;;  %s2496_s27 = sadd.s32 4294967295, %s2366_s26   ;;  %s2366_s26 = sphi %s2463_s26, %s32_s26   ;;  %s2362_s25 = sphi %s2461_s25, %s3304_s25   ;;  %s2358_s24 = sphi %s2459_s24, %s3303_s24   ;;  %s2354_s23 = sphi %s2457_s23, %s3295_s23   ;;  %s2350_s22 = sphi %s2455_s22, %s3302_s22   ;;  %s2346_s21 = sphi %s2453_s21, %s3301_s21   ;;  %s2342_s20 = sphi %s2451_s20, %s3300_s20   ;;  %s2338_s19 = sphi %s2449_s19, %s3293_s19   ;;  %s2334_s18 = sphi %s2447_s18, %s3299_s18   ;;  %s2330_s17 = sphi %s2445_s17, %s3298_s17  }
  0x15   : > { %3248 = sst [smem:[#allocation19_spill]] %s2338_s19  ;;  %s41_s29 = sadd.s32 1, %s2358_s24 }
  0x16   : > { %3249 = sst [smem:[#allocation20_spill]] %s2362_s25  ;;  %s44_s30 = sadd.s32 1, %s2362_s25 }
  0x17   : > { %p42_p0 = scmp.ge.s32.totalorder %s41_s29, 3  ;;  %s187_s12 = sadd.s32 1, %s2346_s21 }
  0x18   : > { %p194_p1 = scmp.ne.s32.totalorder %s2346_s21, %s2342_s20  ;;  %p195_p2 = scmp.eq.s32.totalorder %s2366_s26, 0 }
  0x19   : > { %s3306_s29 = smov (%p42_p0, %s41_s29), 0  ;;  %s3308_s30 = smov (!%p42_p0, %s44_s30), %s2362_s25 }
  0x1a   : > { %3250 = sst [smem:[#allocation21_spill]] %s3306_s29  ;;  %s184_s13 = ssub.s32 %s2358_s24, %s3306_s29 }
  0x1b   : > { %p2510_p3 = por %p195_p2, %p194_p1  ;;  %p46_p4 = scmp.ge.s32.totalorder %s3308_s30, 5 }
  0x1c   : > { %p185_p5 = scmp.eq.s32.totalorder %s184_s13, 0  ;;  %s241_s15 = sadd.s32 1, %s2338_s19 }
  0x1d   : > { %s3251_s14 = scalar_select %p2510_p3, 1, 0 }
  0x1e   : > { %p251_p6 = scmp.ne.s32.totalorder %s2338_s19, %s2334_s18  ;;  %s3310_s30 = smov (%p46_p4, %s3308_s30), 0 }
  0x1f   : > { %3252 = sst [smem:[#allocation22_spill]] %s3310_s30  ;;  %s236_s28 = ssub.s32 %s2362_s25, %s3310_s30 }
  0x20   : > { %s2520_s16 = scalar_select %p185_p5, %s2346_s21, %s187_s12  }
  0x21   : > { %p252_p7 = scmp.eq.s32.totalorder %s2496_s27, 14  ;;  %s238_s29 = sor.u32 %s236_s28, %s184_s13 }
  0x22   : > { %3253 = sst [smem:[#allocation23_spill]] %s2520_s16  ;;  %p257_p8 = scmp.ne.s32.totalorder %s2334_s18, %s2330_s17 }
  0x23   : > { %p239_p9 = scmp.eq.s32.totalorder %s238_s29, 0  ;;  %p2527_p10 = por %p252_p7, %p251_p6 }
  0x24   : > { %s3255_s10 = sadd.s32 4294967294, %s2366_s26   ;;  %p1694_p12 = scmp.ge.s32.totalorder %s2366_s26, 1 }
  0x25   : > { %s3254_s11 = scalar_select %p2527_p10, 1, 0 }
  0x26   : > { %p258_p11 = scmp.eq.s32.totalorder %s3255_s10, 14  ;;  %p349_p0 = scmp.lt.s32.totalorder %s2366_s26, 16 }
  0x27   : > { %s2535_s9 = scalar_select %p239_p9, %s2338_s19, %s241_s15  }
  0x28   : > { %p2537_p13 = por %p258_p11, %p257_p8  ;;  %p3228_p1 = scmp.eq.s32.totalorder %s2496_s27, 0 }
  0x29   : > { %3256 = sst [smem:[#allocation24_spill]] %s2535_s9  ;;  %p2543_p2 = pnand %p1694_p12, %p349_p0 }
  0x2a   : > { %s3257_s8 = scalar_select %p2537_p13, 1, 0 }
  0x2b   : > { %s3259_s12 = scalar_select %p2543_p2, 1, 0 }
  0x2c   : > { %3258 = sst [smem:[#allocation25_spill]] %s3257_s8  ;;  %s2368_s28 = smov [#allocation3]  }
  0x2d   : > { %s367_s29 = sshll.u32 %s2368_s28, 4  ;;  %p1983_p4 = pneg %p2543_p2  ;;  %s368_s29 = int_to_ptr.vmem [resolvable:$true] %s367_s29 }
  0x2e   : > { %s3261_s4 = sld [smem:[#allocation28_spill]] }
  0x2f   : > { %p2551_p5 = pnand %p3228_p1, %p1983_p4 }
  0x31   : > { %p2134_p7 = pneg %p2551_p5 }
  0x34   : > { %s2132_s30 = scalar_lea.hbm %s3261_s4, 2048 }
  0x35   : > { %p2133_p6 = scmp.ne.s32.totalorder %s3261_s4, %s2132_s30  ;;  %p2139_p11 = scmp.lt.u32.totalorder %s2132_s30, %s3261_s4 }
  0x37   : > { %p2135_p8 = pnand %p2134_p7, %p2133_p6 }
  0x39   : > { %p2136_p9 = pneg %p2135_p8 }
  0x3b   : > { %p2141_p12 = pnand %p2139_p11, %p2136_p9 }
  0x3d   : > { %2144 = shalt.err (!%p2141_p12)
}
  0x3e   : > { %s2145_s19 = scalar_lea.vmem %s368_s29, 2048  ;;  %p2153_p13 = scmp.lt.s32.totalorder %s368_s29, %s368_s29 }
  0x3f   : > { %p2146_p0 = scmp.ne.s32.totalorder %s368_s29, %s2145_s19  ;;  %p2154_p10 = scmp.lt.s32.totalorder %s2145_s19, %s2145_s19 }
  0x41   : > { %p2148_p4 = pnand %p2146_p0, %p2134_p7  ;;  %p2155_p2 = por %p2154_p10, %p2153_p13 }
  0x43   : > { %p2149_p1 = pneg %p2148_p4 }
  0x45   : > { %p2156_p3 = pnand %p2155_p2, %p2149_p1 }
  0x47   : > { %2159 = shalt.err (!%p2156_p3)
}
  0x48   : > { %s2369_s25 = smov 128   ;;  %s2370_s16 = smov 8  }
  0x49   : > { %1986 = dma.hbm_to_vmem [thread:$0]  (!%p2551_p5), %s3261_s4, 2048, %s368_s29, [#allocation4], %s2369_s25, %s2369_s25, %s2370_s16  }
  0x4a   : > { %p1696_p6 = scmp.ge.s32.totalorder %s2366_s26, 15 }
  0x4b   : > { %p3262_p8 = scmp.ne.s32.totalorder (!%p1696_p6), %s3251_s14, 0 }
  0x4c   : > { %380 = sbr.rel (%p1696_p6) target bundleno = 110 (0x6e), region = 32 }
  0x53   : > { %401 = sbr.rel (!%p3262_p8) target bundleno = 101 (0x65), region = 44  ;;  %s403_s9 = sand.u32 (%p3262_p8), 1, %s2346_s21  }
  0x54   : > { %s1698_s19 = sshll.u32 (%p3262_p8), %s2358_s24, 3  ;;  %s1697_s30 = sshll.u32 (%p3262_p8), %s403_s9, 7 }
  0x55   : > { %s3263_s6 = sld [smem:[#allocation29_spill]] (%p3262_p8)  ;;  %s405_s29 = scalar_lea.vmem (%p3262_p8), [#allocation6], %s1697_s30 }
  0x5b   : > { %s2579_s17 = scalar_lea.vmem %s3263_s6, %s1698_s19 }
  0x5c   : > { %v465_v0 = vld [vmem:[%s2579_s17] sm:$0xff]  ;;  %v467_v1 = vld [vmem:[%s2579_s17 + $0x18] sm:$0xff]  ;;  %v469_v2 = vld [vmem:[%s2579_s17 + $0x30] sm:$0xff] }
  0x5d   : > { %466 = vst [vmem:[%s405_s29] sm:$0xff] %v465_v0  ;;  %468 = vst [vmem:[%s405_s29 + $0x8] sm:$0xff] %v467_v1  ;;  %v471_v3 = vld [vmem:[%s2579_s17 + $0x48] sm:$0xff]  ;;  %v473_v4 = vld [vmem:[%s2579_s17 + $0x60] sm:$0xff] }
  0x5e   : > { %470 = vst [vmem:[%s405_s29 + $0x10] sm:$0xff] %v469_v2  ;;  %v475_v5 = vld [vmem:[%s2579_s17 + $0x78] sm:$0xff]  ;;  %472 = vst [vmem:[%s405_s29 + $0x18] sm:$0xff] %v471_v3  ;;  %v477_v6 = vld [vmem:[%s2579_s17 + $0x90] sm:$0xff] }
  0x5f   : > { %474 = vst [vmem:[%s405_s29 + $0x20] sm:$0xff] %v473_v4  ;;  %476 = vst [vmem:[%s405_s29 + $0x28] sm:$0xff] %v475_v5  ;;  %v479_v7 = vld [vmem:[%s2579_s17 + $0xa8] sm:$0xff]  ;;  %v481_v8 = vld [vmem:[%s2579_s17 + $0xc0] sm:$0xff] }
  0x60   : > { %478 = vst [vmem:[%s405_s29 + $0x30] sm:$0xff] %v477_v6  ;;  %480 = vst [vmem:[%s405_s29 + $0x38] sm:$0xff] %v479_v7  ;;  %v483_v9 = vld [vmem:[%s2579_s17 + $0xd8] sm:$0xff]  ;;  %v485_v10 = vld [vmem:[%s2579_s17 + $0xf0] sm:$0xff] }
  0x61   : > { %482 = vst [vmem:[%s405_s29 + $0x40] sm:$0xff] %v481_v8  ;;  %v487_v11 = vld [vmem:[%s2579_s17 + $0x108] sm:$0xff]  ;;  %484 = vst [vmem:[%s405_s29 + $0x48] sm:$0xff] %v483_v9  ;;  %v489_v12 = vld [vmem:[%s2579_s17 + $0x120] sm:$0xff] }
  0x62   : > { %486 = vst [vmem:[%s405_s29 + $0x50] sm:$0xff] %v485_v10  ;;  %488 = vst [vmem:[%s405_s29 + $0x58] sm:$0xff] %v487_v11  ;;  %v491_v13 = vld [vmem:[%s2579_s17 + $0x138] sm:$0xff]  ;;  %v493_v14 = vld [vmem:[%s2579_s17 + $0x150] sm:$0xff] }
  0x63   : > { %490 = vst [vmem:[%s405_s29 + $0x60] sm:$0xff] %v489_v12  ;;  %492 = vst [vmem:[%s405_s29 + $0x68] sm:$0xff] %v491_v13  ;;  %v495_v15 = vld [vmem:[%s2579_s17 + $0x168] sm:$0xff] }
  0x64   : > { %494 = vst [vmem:[%s405_s29 + $0x70] sm:$0xff] %v493_v14  ;;  %496 = vst [vmem:[%s405_s29 + $0x78] sm:$0xff] %v495_v15 }
  0x65 PF: > { %p3264_p3 = scmp.ne.s32.totalorder %s3251_s14, 0 }
  0x66   : > { %s504_s8 = sand.u32 (%p3264_p3), 1, %s2346_s21   ;;  %s1700_s10 = sshll.u32 (%p3264_p3), %s2358_s24, 3 }
  0x67   : > { %502 = sbr.rel (!%p3264_p3) target bundleno = 110 (0x6e), region = 82  ;;  %s1699_s25 = sshll.u32 (%p3264_p3), %s504_s8, 4 }
  0x68   : > { %s508_s15 = scalar_lea.vmem (%p3264_p3), %s3215_s7, %s1700_s10  ;;  %s506_s9 = scalar_lea.vmem (%p3264_p3), [#allocation7], %s1699_s25 }
  0x69   : > { %v538_v16 = vld [vmem:[%s508_s15] sm:$0xff] (%p3264_p3)  ;;  %v540_v17 = vld [vmem:[%s508_s15 + $0x18] sm:$0xff] (%p3264_p3) }
  0x6a   : > { %539 = vst [vmem:[%s506_s9] sm:$0xff] (%p3264_p3), %v538_v16  ;;  %541 = vst [vmem:[%s506_s9 + $0x8] sm:$0xff] (%p3264_p3), %v540_v17 }
  0x6e PF: > { %p3265_p10 = scmp.ne.s32.totalorder %s3259_s12, 0 }
  0x6f   : > { %p3266_p13 = scmp.eq.s32.totalorder (!%p3265_p10), %s2496_s27, 0 }
  0x70   : > { %550 = sbr.rel (%p3265_p10) target bundleno = 983 (0x3d7), region = 120 }
  0x77   : > { %2313 = dma.done.wait (%p3266_p13), [#allocation4], 2048   ;;  %p3267_p1 = pmov %p3266_p13 }
  0x78   : > { %s557_s17 = sand.u32 1, %s2342_s20   ;;  %s2612_s14 = sand.u32 1, %s2334_s18  }
  0x79   : > { %2315 = vsyncadd (%p3267_p1), [#allocation4], 4294965248  ;;  %s1703_s19 = sshll.u32 %s557_s17, 7  ;;  %s2614_s30 = sshll.u32 %s557_s17, 4 }
  0x7a   : > { %s1966_s28 = smul.u32 40, %s2612_s14  ;;  %s3268_s0 = sld [smem:[#allocation26_spill]] }
  0x7b   : > { %s632_s12 = smul.u32 5, %s2354_s23  ;;  %s3269_s1 = sld [smem:[#allocation27_spill]] }
  0x7c   : > { %s2628_s15 = scalar_lea.vmem [#allocation6], %s1703_s19  ;;  %s566_s9 = scalar_lea.vmem [#allocation7], %s2614_s30 }
  0x7d   : > { %p633_p2 = scmp.lt.s32.totalorder %s632_s12, 24  ;;  %s2631_s17 = scalar_lea.vmem [#allocation8], %s1966_s28 }
  0x7e   : > { %s2633_s4 = scalar_lea.vmem [#allocation9], %s1966_s28  ;;  %s2635_s6 = scalar_lea.vmem [#allocation11], %s1966_s28 }
  0x7f   : > { %s3312_s12 = smov (!%p633_p2, %s632_s12), 24  ;;  %p1707_p5 = scmp.ne.s32.totalorder %s2350_s22, 0 }
  0x80   : > { %s1705_s29 = sshll.u32 %s3312_s12, 3  ;;  %s2637_s12 = scalar_lea.vmem [#allocation12], %s1966_s28  ;;  %v657_v18 = vld [vmem:[%s3210_s2] sm:$0xff] (!%p1707_p5)  ;;  %v658_v19 = vld [vmem:[%s3210_s2 + $0x8] sm:$0xff] (!%p1707_p5)  ;;  %v2371_v20 = vmov (!%p1707_p5), 0.0|0.0   ;;  %vm2372_vm0 = vmmov (!%p1707_p5), 0  }
  0x81   : > { %s2621_s25 = scalar_lea.vmem %s3268_s0, %s1705_s29  ;;  %s2626_s20 = scalar_lea.vmem %s3269_s1, %s1705_s29  ;;  %1883 = vmatprep.subr.bf16.mxu0 (!%p1707_p5), %v2371_v20  ;;  %v1884_v21 = vpack.c.bf16 (!%p1707_p5), %v658_v19, %v657_v18  ;;  %v2373_v22 = vmov (!%p1707_p5), 0.0   ;;  %v792_v23 = vld [vmem:[#allocation3] sm:$0xff] (!%p1707_p5)  ;;  %v793_v24 = vld [vmem:[#allocation3 + $0x8] sm:$0xff] (!%p1707_p5)  ;;  %1934 = vmatprep.subr.bf16.mxu1 (!%p1707_p5), %v2371_v20  ;;  %vm666_vm1 = vcmask (!%p1707_p5), 130048   ;;  %v794_v27 = vld [vmem:[#allocation3 + $0x10] sm:$0xff] (!%p1707_p5) }
  0x82   : > { %651 = sbr.rel (%p1707_p5) target bundleno = 589 (0x24d), region = 136  ;;  %1774 = vmatprep.mubr.msk.f32.mxu0 (!%p1707_p5), %vm2372_vm0, %v2373_v22  ;;  %1827 = vmatprep.mubr.msk.f32.mxu1 (!%p1707_p5), %vm2372_vm0, %v2373_v22  ;;  %v652_v25 = vld [vmem:[%s2626_s20] sm:$0xff] (!%p1707_p5)  ;;  %v1887_v26 = vpack.c.bf16 (!%p1707_p5), %v793_v24, %v792_v23  ;;  %v653_v29 = vld [vmem:[%s2626_s20 + $0x8] sm:$0xff] (!%p1707_p5)  ;;  %v797_v32 = vld [vmem:[#allocation3 + $0x28] sm:$0xff] (!%p1707_p5) }
  0x83   : > { %1885 = vmatpush3.bf16.msra.mxu0 (!%p1707_p5), %v1884_v21  ;;  %v795_v28 = vld [vmem:[#allocation3 + $0x18] sm:$0xff] (!%p1707_p5)  ;;  %v796_v31 = vld [vmem:[#allocation3 + $0x20] sm:$0xff] (!%p1707_p5)  ;;  %v654_v33 = vld [vmem:[%s2626_s20 + $0x10] sm:$0xff] (!%p1707_p5) }
  0x84   : > { %1886 = vmatprep.subr.bf16.mxu0 (!%p1707_p5), %v2371_v20  ;;  %1942 = vmatpush3.bf16.msra.mxu1 (!%p1707_p5), %v1887_v26  ;;  %v1890_v30 = vpack.c.bf16 (!%p1707_p5), %v795_v28, %v794_v27  ;;  %v1893_v34 = vpack.c.bf16 (!%p1707_p5), %v797_v32, %v796_v31  ;;  %v798_v35 = vld [vmem:[#allocation3 + $0x30] sm:$0xff] (!%p1707_p5)  ;;  %v799_v36 = vld [vmem:[#allocation3 + $0x38] sm:$0xff] (!%p1707_p5)  ;;  %v800_v39 = vld [vmem:[#allocation3 + $0x40] sm:$0xff] (!%p1707_p5) }
  0x85   : > { %1935 = vmatprep.subr.bf16.mxu1 (!%p1707_p5), %v2371_v20  ;;  %v655_v37 = vld [vmem:[%s2626_s20 + $0x18] sm:$0xff] (!%p1707_p5)  ;;  %v1896_v38 = vpack.c.bf16 (!%p1707_p5), %v799_v36, %v798_v35  ;;  %v801_v40 = vld [vmem:[#allocation3 + $0x48] sm:$0xff] (!%p1707_p5)  ;;  %v656_v41 = vld [vmem:[%s2626_s20 + $0x20] sm:$0xff] (!%p1707_p5) }
  0x86   : > { %1775 = vmatmul.mubr.msk.f32.vlgmr.msra.gmra.mrb[0].mxu0 (!%p1707_p5), %vm666_vm1, %v652_v25  ;;  %v1899_v42 = vpack.c.bf16 (!%p1707_p5), %v801_v40, %v800_v39  ;;  %v802_v43 = vld [vmem:[#allocation3 + $0x50] sm:$0xff] (!%p1707_p5)  ;;  %v803_v44 = vld [vmem:[#allocation3 + $0x58] sm:$0xff] (!%p1707_p5)  ;;  %v804_v46 = vld [vmem:[#allocation3 + $0x60] sm:$0xff] (!%p1707_p5) }
  0x87   : > { %1777 = vmatprep.mubr.msk.f32.mxu0 (!%p1707_p5), %vm2372_vm0, %v2373_v22  ;;  %1888 = vmatpush3.bf16.msra.mxu0 (!%p1707_p5), %v1887_v26  ;;  %v1902_v45 = vpack.c.bf16 (!%p1707_p5), %v803_v44, %v802_v43  ;;  %v805_v47 = vld [vmem:[#allocation3 + $0x68] sm:$0xff] (!%p1707_p5)  ;;  %v806_v49 = vld [vmem:[#allocation3 + $0x70] sm:$0xff] (!%p1707_p5)  ;;  %v807_v50 = vld [vmem:[#allocation3 + $0x78] sm:$0xff] (!%p1707_p5) }
  0x88   : > { %1889 = vmatprep.subr.bf16.mxu0 (!%p1707_p5), %v2371_v20  ;;  %1943 = vmatpush3.bf16.msra.mxu1 (!%p1707_p5), %v1890_v30  ;;  %v1905_v48 = vpack.c.bf16 (!%p1707_p5), %v805_v47, %v804_v46  ;;  %v1908_v51 = vpack.c.bf16 (!%p1707_p5), %v807_v50, %v806_v49  ;;  %v1708_v52 = vld [vmem:[%s3211_s3] ss:$0 sm:$0xff] (!%p1707_p5) }
  0x89   : > { %1936 = vmatprep.subr.bf16.mxu1 %v2371_v20  ;;  %v1714_v19 = vld [vmem:[%s3213_s5] ss:$0 sm:$0xff] }
  0x8a   : > { %1778 = vmatmul.mubr.msk.f32.gmra.mrb[2].mxu0 %vm666_vm1, %v653_v29 }
  0x8b   : > { %1780 = vmatprep.mubr.msk.f32.mxu0 %vm2372_vm0, %v2373_v22  ;;  %1891 = vmatpush3.bf16.msra.mxu0 %v1890_v30 }
  0x8c   : > { %1892 = vmatprep.subr.bf16.mxu0 %v2371_v20  ;;  %1944 = vmatpush3.bf16.msra.mxu1 %v1893_v34 }
  0x8d   : > { %1937 = vmatprep.subr.bf16.mxu1 %v2371_v20 }
  0x8e   : > { %1781 = vmatmul.mubr.msk.f32.gmra.mrb[4].mxu0 %vm666_vm1, %v654_v33 }
  0x8f   : > { %1783 = vmatprep.mubr.msk.f32.mxu0 %vm2372_vm0, %v2373_v22  ;;  %1894 = vmatpush3.bf16.msra.mxu0 %v1893_v34 }
  0x90   : > { %1895 = vmatprep.subr.bf16.mxu0 %v2371_v20  ;;  %1945 = vmatpush3.bf16.msra.mxu1 %v1896_v38 }
  0x91   : > { %1938 = vmatprep.subr.bf16.mxu1 %v2371_v20 }
  0x92   : > { %1784 = vmatmul.mubr.msk.f32.gmra.mrb[6].mxu0 %vm666_vm1, %v655_v37 }
  0x93   : > { %1786 = vmatprep.mubr.msk.f32.mxu0 %vm2372_vm0, %v2373_v22  ;;  %1897 = vmatpush3.bf16.msra.mxu0 %v1896_v38 }
  0x94   : > { %1898 = vmatprep.subr.bf16.mxu0 %v2371_v20  ;;  %1946 = vmatpush3.bf16.msra.mxu1 %v1899_v42 }
  0x95   : > { %1939 = vmatprep.subr.bf16.mxu1 %v2371_v20 }
  0x96   : > { %1787 = vmatmul.mubr.msk.f32.gmra.mrb[8].mxu0 %vm666_vm1, %v656_v41 }
  0x97   : > { %1900 = vmatpush3.bf16.msra.mxu0 %v1899_v42  ;;  %1821 = vmatprep.mubr.msk.f32.mxu0 %vm2372_vm0, %v2373_v22 }
  0x98   : > { %1901 = vmatprep.subr.bf16.mxu0 %v2371_v20  ;;  %1947 = vmatpush3.bf16.msra.mxu1 %v1902_v45 }
  0x99   : > { %1940 = vmatprep.subr.bf16.mxu1 %v2371_v20 }
  0x9b   : > { %1903 = vmatpush3.bf16.msra.mxu0 %v1902_v45 }
  0x9c   : > { %1904 = vmatprep.subr.bf16.mxu0 %v2371_v20  ;;  %1948 = vmatpush3.bf16.msra.mxu1 %v1905_v48 }
  0x9d   : > { %1941 = vmatprep.subr.bf16.mxu1 %v2371_v20 }
  0x9f   : > { %1906 = vmatpush3.bf16.msra.mxu0 %v1905_v48 }
  0xa0   : > { %1907 = vmatprep.subr.bf16.mxu0 %v2371_v20  ;;  %1949 = vmatpush3.bf16.msra.mxu1 %v1908_v51 }
  0xa3   : > { %1909 = vmatpush3.bf16.msra.mxu0 %v1908_v51 }
 0x159   : > { %v748_v53 = vpop.f32.mrb[0].mxu0 }
 0x15a   : > { %v749_v54 = vadd.f32 %v1708_v52, %v748_v53  ;;  %v1776_v55 = vpop.f32.mrb[1].mxu0 }
 0x15c   : > { %v772_v56 = vmul.f32 0.999995, %v749_v54 }
 0x15d   : > { %v753_v57 = vpop.f32.mrb[2].mxu0 }
 0x15e   : > { %vm777_vm2 = vcmp.gt.f32.partialorder %v772_v56, 0.0  ;;  %v782_v58 = vmul.f32 0.01, %v772_v56  ;;  %v754_v59 = vadd.f32 %v1708_v52, %v753_v57  ;;  %v1779_v60 = vpop.f32.mrb[3].mxu0 }
 0x160   : > { %v787_v61 = vsel %vm777_vm2, %v772_v56, %v782_v58  ;;  %v773_v62 = vmul.f32 0.999995, %v754_v59 }
 0x161   : > { %v758_v63 = vpop.f32.mrb[4].mxu0  ;;  %1822 = vmatmul.mubr.f32.vlgmr.msra.gmra.mrb[10].mxu0 %v787_v61 }
 0x162   : > { %v783_v0 = vmul.f32 0.01, %v773_v62  ;;  %v759_v1 = vadd.f32 %v1708_v52, %v758_v63  ;;  %v1782_v2 = vpop.f32.mrb[5].mxu0  ;;  %1824 = vmatprep.mubr.msk.f32.mxu0 %vm2372_vm0, %v2373_v22  ;;  %vm778_vm3 = vcmp.gt.f32.partialorder %v773_v62, 0.0 }
 0x164   : > { %v774_v3 = vmul.f32 0.999995, %v759_v1  ;;  %v788_v4 = vsel %vm778_vm3, %v773_v62, %v783_v0 }
 0x165   : > { %v763_v5 = vpop.f32.mrb[6].mxu0  ;;  %1825 = vmatmul.mubr.f32.gmra.mrb[12].mxu0 %v788_v4 }
 0x166   : > { %v784_v6 = vmul.f32 0.01, %v774_v3  ;;  %v764_v7 = vadd.f32 %v1708_v52, %v763_v5  ;;  %v1785_v8 = vpop.f32.mrb[7].mxu0  ;;  %vm779_vm4 = vcmp.gt.f32.partialorder %v774_v3, 0.0 }
 0x168   : > { %v775_v9 = vmul.f32 0.999995, %v764_v7  ;;  %v789_v10 = vsel %vm779_vm4, %v774_v3, %v784_v6 }
 0x169   : > { %v768_v11 = vpop.f32.mrb[8].mxu0  ;;  %1828 = vmatmul.mubr.f32.vlgmr.msra.gmra.mrb[0].mxu1 %v789_v10 }
 0x16a   : > { %v785_v12 = vmul.f32 0.01, %v775_v9  ;;  %v769_v13 = vadd.f32 %v1708_v52, %v768_v11  ;;  %v1788_v14 = vpop.f32.mrb[9].mxu0  ;;  %1830 = vmatprep.mubr.msk.f32.mxu1 %vm2372_vm0, %v2373_v22  ;;  %vm780_vm5 = vcmp.gt.f32.partialorder %v775_v9, 0.0 }
 0x16c   : > { %v776_v15 = vmul.f32 0.999995, %v769_v13  ;;  %v790_v16 = vsel %vm780_vm5, %v775_v9, %v785_v12 }
 0x16d   : > { %1831 = vmatmul.mubr.f32.gmra.mrb[2].mxu1 %v790_v16 }
 0x16e   : > { %v786_v17 = vmul.f32 0.01, %v776_v15  ;;  %1833 = vmatprep.mubr.msk.f32.mxu1 %vm2372_vm0, %v2373_v22  ;;  %vm781_vm6 = vcmp.gt.f32.partialorder %v776_v15, 0.0 }
 0x170   : > { %v791_v18 = vsel %vm781_vm6, %v776_v15, %v786_v17 }
 0x171   : > { %1834 = vmatmul.mubr.f32.gmra.mrb[4].mxu1 %v791_v18 }
 0x234   : > { %v881_v20 = vpop.f32.mrb[10].mxu0 }
 0x235   : > { %v882_v21 = vadd.f32 %v1714_v19, %v881_v20  ;;  %v1823_v23 = vpop.f32.mrb[11].mxu0 }
 0x237   : > { %v905_v24 = vmul.f32 0.999995, %v882_v21 }
 0x238   : > { %v886_v25 = vpop.f32.mrb[12].mxu0 }
 0x239   : > { %vm910_vm7 = vcmp.gt.f32.partialorder %v905_v24, 0.0  ;;  %v915_v26 = vmul.f32 0.01, %v905_v24  ;;  %v887_v27 = vadd.f32 %v1714_v19, %v886_v25  ;;  %v1826_v28 = vpop.f32.mrb[13].mxu0 }
 0x23b   : > { %v920_v29 = vsel %vm910_vm7, %v905_v24, %v915_v26  ;;  %v906_v30 = vmul.f32 0.999995, %v887_v27 }
 0x23c   : > { %925 = vst [vmem:[#allocation2] sm:$0xff] %v920_v29  ;;  %v891_v22 = vpop.f32.mrb[0].mxu1 }
 0x23d   : > { %vm911_vm8 = vcmp.gt.f32.partialorder %v906_v30, 0.0  ;;  %v916_v31 = vmul.f32 0.01, %v906_v30  ;;  %v892_v32 = vadd.f32 %v1714_v19, %v891_v22  ;;  %v1829_v33 = vpop.f32.mrb[1].mxu1 }
 0x23f   : > { %v921_v34 = vsel %vm911_vm8, %v906_v30, %v916_v31  ;;  %v907_v35 = vmul.f32 0.999995, %v892_v32 }
 0x240   : > { %926 = vst [vmem:[#allocation2 + $0x8] sm:$0xff] %v921_v34  ;;  %v896_v36 = vpop.f32.mrb[2].mxu1 }
 0x241   : > { %vm912_vm9 = vcmp.gt.f32.partialorder %v907_v35, 0.0  ;;  %v917_v37 = vmul.f32 0.01, %v907_v35  ;;  %v897_v38 = vadd.f32 %v1714_v19, %v896_v36  ;;  %v1832_v39 = vpop.f32.mrb[3].mxu1 }
 0x243   : > { %v922_v40 = vsel %vm912_vm9, %v907_v35, %v917_v37  ;;  %v908_v41 = vmul.f32 0.999995, %v897_v38 }
 0x244   : > { %927 = vst [vmem:[#allocation2 + $0x10] sm:$0xff] %v922_v40  ;;  %v901_v42 = vpop.f32.mrb[4].mxu1 }
 0x245   : > { %vm913_vm10 = vcmp.gt.f32.partialorder %v908_v41, 0.0  ;;  %v918_v43 = vmul.f32 0.01, %v908_v41  ;;  %v902_v44 = vadd.f32 %v1714_v19, %v901_v42  ;;  %v1835_v45 = vpop.f32.mrb[5].mxu1 }
 0x247   : > { %v923_v46 = vsel %vm913_vm10, %v908_v41, %v918_v43  ;;  %v909_v47 = vmul.f32 0.999995, %v902_v44 }
 0x248   : > { %928 = vst [vmem:[#allocation2 + $0x18] sm:$0xff] %v923_v46 }
 0x249   : > { %vm914_vm11 = vcmp.gt.f32.partialorder %v909_v47, 0.0  ;;  %v919_v48 = vmul.f32 0.01, %v909_v47 }
 0x24b   : > { %v924_v49 = vsel %vm914_vm11, %v909_v47, %v919_v48 }
 0x24c   : > { %929 = vst [vmem:[#allocation2 + $0x20] sm:$0xff] %v924_v49 }
 0x24d PF: > { %v937_v50 = vld [vmem:[%s2628_s15] sm:$0xff]  ;;  %v938_v51 = vld [vmem:[%s2628_s15 + $0x8] sm:$0xff]  ;;  %v939_v52 = vld [vmem:[%s2628_s15 + $0x10] sm:$0xff]  ;;  %v2374_v53 = vmov 0.0|0.0   ;;  %vm2375_vm12 = vmmov 0   ;;  %v2376_v56 = vmov 0.0   ;;  %v953_v24 = vlaneseq }
 0x24e   : > { %1910 = vmatprep.subr.bf16.mxu0 %v2374_v53  ;;  %1950 = vmatprep.subr.bf16.mxu1 %v2374_v53  ;;  %v1911_v54 = vpack.c.bf16 %v938_v51, %v937_v50  ;;  %v940_v55 = vld [vmem:[%s2628_s15 + $0x18] sm:$0xff]  ;;  %v941_v58 = vld [vmem:[%s2628_s15 + $0x20] sm:$0xff]  ;;  %v942_v59 = vld [vmem:[%s2628_s15 + $0x28] sm:$0xff]  ;;  %v2377_v60 = vmov 0   ;;  %s2002_s30 = smul.u32 15, %s2354_s23  ;;  %s3275_s10 = sld [smem:[#allocation30_spill]] }
 0x24f   : > { %1868 = vmatprep.mubr.msk.f32.mxu0 %vm2375_vm12, %v2376_v56  ;;  %1877 = vmatprep.mubr.msk.f32.mxu1 %vm2375_vm12, %v2376_v56  ;;  %v1914_v57 = vpack.c.bf16 %v940_v55, %v939_v52  ;;  %v1917_v61 = vpack.c.bf16 %v942_v59, %v941_v58  ;;  %v1076_v62 = vld [vmem:[%s2621_s25] sm:$0xff]  ;;  %v1078_v63 = vld [vmem:[%s2621_s25 + $0x10] sm:$0xff]  ;;  %v943_v0 = vld [vmem:[%s2628_s15 + $0x30] sm:$0xff]  ;;  %v2746_v25 = vshrl.u32 %v953_v24, 7  ;;  %s3276_s16 = sld [smem:[#allocation31_spill]]  ;;  %p3277_p9 = scmp.ne.s32.totalorder %s3254_s11, 0 }
 0x250   : > { %1912 = vmatpush3.bf16.msra.mxu0 %v1911_v54  ;;  %1958 = vmatpush3.bf16.msra.mxu1 %v1911_v54  ;;  %v944_v1 = vld [vmem:[%s2628_s15 + $0x38] sm:$0xff]  ;;  %v1077_v2 = vld [vmem:[%s2621_s25 + $0x8] sm:$0xff]  ;;  %v1079_v3 = vld [vmem:[%s2621_s25 + $0x18] sm:$0xff]  ;;  %s1401_s23 = sadd.s32 %s2350_s22, %s2002_s30  ;;  %s1404_s22 = sshll.u32 %s2631_s17, 4  ;;  %s3020_s22 = int_to_ptr.vmem [resolvable:$true] %s1404_s22 }
 0x251   : > { %1913 = vmatprep.subr.bf16.mxu0 %v2374_v53  ;;  %1951 = vmatprep.subr.bf16.mxu1 %v2374_v53  ;;  %v1920_v4 = vpack.c.bf16 %v944_v1, %v943_v0  ;;  %v945_v5 = vld [vmem:[%s2628_s15 + $0x40] sm:$0xff]  ;;  %v946_v6 = vld [vmem:[%s2628_s15 + $0x48] sm:$0xff]  ;;  %v1080_v7 = vld [vmem:[%s2621_s25 + $0x20] sm:$0xff]  ;;  %v1108_v27 = vsub.s32 5, %v2746_v25  ;;  %v2756_v35 = vsub.s32 2, %v2746_v25  ;;  %v2759_v38 = vsub.s32 3, %v2746_v25 }
 0x252   : > { %2100 = vset.pattern.permute.xlu0 %v2377_v60  ;;  %2101 = vset.pattern.permute.xlu1 %v2377_v60  ;;  %v1923_v8 = vpack.c.bf16 %v946_v6, %v945_v5  ;;  %v947_v9 = vld [vmem:[%s2628_s15 + $0x50] sm:$0xff]  ;;  %v948_v10 = vld [vmem:[%s2628_s15 + $0x58] sm:$0xff]  ;;  %v949_v12 = vld [vmem:[%s2628_s15 + $0x60] sm:$0xff]  ;;  %v955_v55 = vsub.s32 0, %v2746_v25  ;;  %s2160_s8 = scalar_lea.vmem %s3020_s22, 640  ;;  %s2378_s19 = smov [#allocation8]  }
 0x253   : > { %1083 = vperm.xlu0 %2100, %v1076_v62   ;;  %1093 = vperm.xlu1 %2101, %v1078_v63   ;;  %v1926_v11 = vpack.c.bf16 %v948_v10, %v947_v9  ;;  %v950_v13 = vld [vmem:[%s2628_s15 + $0x68] sm:$0xff]  ;;  %v951_v15 = vld [vmem:[%s2628_s15 + $0x70] sm:$0xff]  ;;  %v952_v16 = vld [vmem:[%s2628_s15 + $0x78] sm:$0xff]  ;;  %s3004_s15 = sshll.u32 %s1401_s23, 7  ;;  %p2161_p7 = scmp.ne.s32.totalorder %s3020_s22, %s2160_s8 }
 0x254   : > { %1915 = vmatpush3.bf16.msra.mxu0 %v1914_v57  ;;  %1959 = vmatpush3.bf16.msra.mxu1 %v1914_v57  ;;  %v1929_v14 = vpack.c.bf16 %v950_v13, %v949_v12  ;;  %v1932_v17 = vpack.c.bf16 %v952_v16, %v951_v15  ;;  %v932_v18 = vld [vmem:[#allocation2] sm:$0xff]  ;;  %v935_v19 = vld [vmem:[#allocation2 + $0x18] sm:$0xff]  ;;  %v933_v20 = vld [vmem:[#allocation2 + $0x8] sm:$0xff]  ;;  %s3018_s29 = scalar_lea.hbm %s3275_s10, %s3004_s15  ;;  %s2164_s28 = sshll.u32 %s2378_s19, 4  ;;  %s2165_s28 = int_to_ptr.vmem [resolvable:$false] %s2164_s28 }
 0x255   : > { %1916 = vmatprep.subr.bf16.mxu0 %v2374_v53  ;;  %1952 = vmatprep.subr.bf16.mxu1 %v2374_v53  ;;  %v936_v21 = vld [vmem:[#allocation2 + $0x20] sm:$0xff]  ;;  %v934_v23 = vld [vmem:[#allocation2 + $0x10] sm:$0xff]  ;;  %v2751_v28 = vld [vmem:[%s566_s9] sm:$0xff]  ;;  %s3026_s13 = scalar_lea.hbm %s3276_s16, %s3004_s15  ;;  %p2162_p11 = pnand %p2161_p7, %p3277_p9 }
 0x256   : > { %v1109_v30 = vrot.slane %v2751_v28, %v1108_v27  ;;  %v1130_v34 = vsub.f32 0.0, %v2751_v28  ;;  %v2782_v0 = vrot.slane %v2751_v28, %v955_v55  ;;  %v1203_v13 = vrot.slane %v2751_v28, 4  ;;  %s2166_s25 = scalar_lea.vmem %s2165_s28, 1280  ;;  %p2167_p0 = scmp.lt.s32.totalorder %s3020_s22, %s2165_s28 }
 0x257   : > { %1088 = vperm.xlu0 %2100, %v1077_v2   ;;  %1098 = vperm.xlu1 %2101, %v1079_v3   ;;  %v1171_v27 = vsub.s32 6, %v2746_v25  ;;  %p2163_p12 = pneg %p2162_p11  ;;  %p2168_p4 = scmp.lt.s32.totalorder %s2166_s25, %s2160_s8 }
 0x258   : > { %1918 = vmatpush3.bf16.msra.mxu0 %v1917_v61  ;;  %1960 = vmatpush3.bf16.msra.mxu1 %v1917_v61  ;;  %v1134_v42 = vrot.slane %v1130_v34, %v2756_v35  ;;  %v1153_v44 = vrot.slane %v1130_v34, %v2759_v38 }
 0x259   : > { %1919 = vmatprep.subr.bf16.mxu0 %v2374_v53  ;;  %1953 = vmatprep.subr.bf16.mxu1 %v2374_v53  ;;  %p2169_p6 = por %p2168_p4, %p2167_p0 }
 0x25b   : > { %1103 = vperm.xlu0 %2100, %v1080_v7   ;;  %p2170_p8 = pnand %p2169_p6, %p2163_p12 }
 0x25c   : > { %1921 = vmatpush3.bf16.msra.mxu0 %v1920_v4  ;;  %1961 = vmatpush3.bf16.msra.mxu1 %v1920_v4 }
 0x25d   : > { %1922 = vmatprep.subr.bf16.mxu0 %v2374_v53  ;;  %1954 = vmatprep.subr.bf16.mxu1 %v2374_v53 }
 0x260   : > { %1924 = vmatpush3.bf16.msra.mxu0 %v1923_v8  ;;  %1962 = vmatpush3.bf16.msra.mxu1 %v1923_v8 }
 0x261   : > { %1925 = vmatprep.subr.bf16.mxu0 %v2374_v53  ;;  %1955 = vmatprep.subr.bf16.mxu1 %v2374_v53 }
 0x264   : > { %1927 = vmatpush3.bf16.msra.mxu0 %v1926_v11  ;;  %1963 = vmatpush3.bf16.msra.mxu1 %v1926_v11 }
 0x265   : > { %1928 = vmatprep.subr.bf16.mxu0 %v2374_v53  ;;  %1956 = vmatprep.subr.bf16.mxu1 %v2374_v53 }
 0x268   : > { %1930 = vmatpush3.bf16.msra.mxu0 %v1929_v14  ;;  %1964 = vmatpush3.bf16.msra.mxu1 %v1929_v14 }
 0x269   : > { %1931 = vmatprep.subr.bf16.mxu0 %v2374_v53  ;;  %1957 = vmatprep.subr.bf16.mxu1 %v2374_v53 }
 0x26c   : > { %1933 = vmatpush3.bf16.msra.mxu0 %v1932_v17  ;;  %1965 = vmatpush3.bf16.msra.mxu1 %v1932_v17 }
 0x26f   : > { %1869 = vmatmul.mubr.f32.vlgmr.msra.gmra.mrb[0].mxu0 %v932_v18  ;;  %1878 = vmatmul.mubr.f32.vlgmr.msra.gmra.mrb[0].mxu1 %v935_v19 }
 0x270   : > { %1871 = vmatprep.mubr.msk.f32.mxu0 %vm2375_vm12, %v2376_v56  ;;  %1880 = vmatprep.mubr.msk.f32.mxu1 %vm2375_vm12, %v2376_v56 }
 0x273   : > { %1872 = vmatmul.mubr.f32.gmra.mrb[2].mxu0 %v933_v20  ;;  %1881 = vmatmul.mubr.f32.gmra.mrb[2].mxu1 %v936_v21  ;;  %v1069_v20 = vsub.s32 1, %v2746_v25 }
 0x274   : > { %1874 = vmatprep.mubr.msk.f32.mxu0 %vm2375_vm12, %v2376_v56 }
 0x277   : > { %1875 = vmatmul.mubr.f32.gmra.mrb[4].mxu0 %v934_v23 }
 0x2d2   : > { %v1084_v26 = vpop.permute.xlu0 %1083  ;;  %v1094_v29 = vpop.permute.xlu1 %1093 }
 0x2d3   : > { %v1110_v31 = vsub.f32 %v1084_v26, %v1109_v30  ;;  %v1112_v50 = vsub.f32 %v1094_v29, %v1109_v30  ;;  %v1205_v29 = vmul.f32 %v1203_v13, %v2751_v28 }
 0x2d5   : > { %v1120_v37 = vmul.f32 0.0, %v1110_v31  ;;  %vm1115_vm13 = vcmp.gt.f32.partialorder %v1110_v31, 0.0  ;;  %v1122_v59 = vmul.f32 0.0, %v1112_v50  ;;  %vm1117_vm1 = vcmp.gt.f32.partialorder %v1112_v50, 0.0 }
 0x2d6   : > { %v1089_v22 = vpop.permute.xlu0 %1088  ;;  %v1099_v32 = vpop.permute.xlu1 %1098 }
 0x2d7   : > { %v1111_v33 = vsub.f32 %v1089_v22, %v1109_v30  ;;  %v1113_v39 = vsub.f32 %v1099_v32, %v1109_v30  ;;  %v2762_v43 = vsel %vm1115_vm13, %v1110_v31, %v1120_v37  ;;  %v2784_v2 = vsel %vm1117_vm1, %v1112_v50, %v1122_v59 }
 0x2d8   : > { %v1135_v48 = vmul.f32 %v1134_v42, %v2762_v43  ;;  %v1154_v49 = vmul.f32 %v1153_v44, %v2762_v43  ;;  %v1137_v12 = vmul.f32 %v1134_v42, %v2784_v2  ;;  %v1156_v17 = vmul.f32 %v1153_v44, %v2784_v2 }
 0x2d9   : > { %v1121_v40 = vmul.f32 0.0, %v1111_v33  ;;  %vm1116_vm14 = vcmp.gt.f32.partialorder %v1111_v33, 0.0  ;;  %v1123_v45 = vmul.f32 0.0, %v1113_v39  ;;  %vm1118_vm15 = vcmp.gt.f32.partialorder %v1113_v39, 0.0 }
 0x2da   : > { %v1104_v36 = vpop.permute.xlu0 %1103  ;;  %v1140_v56 = vmul.f32 1.442695, %v1135_v48  ;;  %v1159_v58 = vmul.f32 1.442695, %v1154_v49  ;;  %v1144_v22 = vmul.f32 1.442695, %v1137_v12  ;;  %v2820_v49 = vrot.slane %v2751_v28, %v1069_v20 }
 0x2db   : > { %v1114_v41 = vsub.f32 %v1104_v36, %v1109_v30  ;;  %v2765_v46 = vsel %vm1116_vm14, %v1111_v33, %v1121_v40  ;;  %v2769_v51 = vsel %vm1118_vm15, %v1113_v39, %v1123_v45  ;;  %v1251_v30 = vsub.s32 7, %v2746_v25  ;;  %v931_v36 = vld [vmem:[%s566_s9 + $0x8] sm:$0xf]  ;;  %s1374_s9 = scalar_lea.sflag [#allocation5], %s2612_s14 }
 0x2dc   : > { %v1136_v52 = vmul.f32 %v1134_v42, %v2765_v46  ;;  %v1155_v53 = vmul.f32 %v1153_v44, %v2765_v46  ;;  %v1138_v57 = vmul.f32 %v1134_v42, %v2769_v51  ;;  %v1157_v60 = vmul.f32 %v1153_v44, %v2769_v51 }
 0x2dd   : > { %v1124_v47 = vmul.f32 0.0, %v1114_v41  ;;  %vm1119_vm0 = vcmp.gt.f32.partialorder %v1114_v41, 0.0  ;;  %2102 = vpow2.f32 %v1140_v56  ;;  %v1163_v34 = vmul.f32 1.442695, %v1156_v17 }
 0x2de   : > { %v1142_v61 = vmul.f32 1.442695, %v1136_v52  ;;  %v1161_v63 = vmul.f32 1.442695, %v1155_v53  ;;  %v1146_v1 = vmul.f32 1.442695, %v1138_v57  ;;  %2104 = vpow2.f32 %v1159_v58 }
 0x2df   : > { %v2773_v54 = vsel %vm1119_vm0, %v1114_v41, %v1124_v47  ;;  %v1165_v4 = vmul.f32 1.442695, %v1157_v60  ;;  %v1318_v40 = vsub.s32 4, %v2746_v25  ;;  %v2812_v45 = vrot.slane %v2751_v28, %v1171_v27 }
 0x2e0   : > { %v1139_v62 = vmul.f32 %v1134_v42, %v2773_v54  ;;  %v1158_v3 = vmul.f32 %v1153_v44, %v2773_v54  ;;  %2106 = vpow2.f32 %v1142_v61  ;;  %v2809_v44 = vrot.slane %v2751_v28, %v2759_v38 }
 0x2e1   : > { %2108 = vpow2.f32 %v1161_v63  ;;  %v2815_v47 = vrot.slane %v2751_v28, %v1251_v30  ;;  %v2824_v50 = vrot.slane %v931_v36, %v955_v55  ;;  %v2827_v52 = vrot.slane %v1205_v29, %v2756_v35 }
 0x2e2   : > { %v1148_v5 = vmul.f32 1.442695, %v1139_v62  ;;  %2110 = vpow2.f32 %v1146_v1  ;;  %v1167_v14 = vmul.f32 1.442695, %v1158_v3  ;;  %v2832_v56 = vrot.slane %v931_v36, %v2756_v35 }
 0x2e3   : > { %2112 = vpow2.f32 %v1165_v4  ;;  %v2834_v57 = vrot.slane %v931_v36, %v1069_v20  ;;  %v2837_v58 = vrot.slane %v931_v36, %v2759_v38  ;;  %v2844_v55 = vrot.slane %v2751_v28, %v1318_v40 }
 0x2e4   : > { %2114 = vpow2.f32 %v1148_v5  ;;  %v2848_v60 = vrot.slane %v2751_v28, %v2756_v35 }
 0x2e7   : > { %v2798_v33 = vpop.eup %2102 }
 0x2e8   : > { %v2802_v39 = vpop.eup %2104  ;;  %v1239_v25 = vmul.f32 %v2798_v33, %v2762_v43  ;;  %v1173_v38 = vmul.f32 %v2798_v33, %v2812_v45  ;;  %v1187_v63 = vsub.f32 1.0, %v2798_v33 }
 0x2e9   : > { %v1224_v1 = vsub.f32 %v2802_v39, %v2798_v33  ;;  %v1253_v43 = vmul.f32 %v2802_v39, %v2815_v47  ;;  %v1267_v35 = vsub.f32 1.0, %v2802_v39 }
 0x2ea   : > { %v2805_v42 = vpop.eup %2106 }
 0x2eb   : > { %v2817_v48 = vpop.eup %2108  ;;  %v2862_v28 = vmul.f32 %v2805_v42, %v2765_v46  ;;  %v1188_v4 = vsub.f32 1.0, %v2805_v42 }
 0x2ec   : > { %v2829_v53 = vpop.eup %2110 }
 0x2ed   : > { %v2839_v59 = vpop.eup %2112  ;;  %v1176_v12 = vmul.f32 %v2829_v53, %v2812_v45 }
 0x2ee   : > { %v2851_v62 = vpop.eup %2114  ;;  %v1256_v17 = vmul.f32 %v2839_v59, %v2815_v47  ;;  %v1270_v20 = vsub.f32 1.0, %v2839_v59 }
 0x342   : > { %v1023_v6 = vpop.f32.mrb[0].mxu0  ;;  %v1038_v7 = vpop.f32.mrb[0].mxu1 }
 0x343   : > { %v1024_v8 = vadd.f32 %v1023_v6, %v2782_v0  ;;  %v1039_v9 = vadd.f32 %v1038_v7, %v2782_v0  ;;  %v1870_v10 = vpop.f32.mrb[1].mxu0  ;;  %v1879_v11 = vpop.f32.mrb[1].mxu1 }
 0x344   : > { %v1242_v10 = vmul.f32 %v2829_v53, %v2769_v51 }
 0x345   : > { %v1047_v15 = vmul.f32 0.5, %v1024_v8  ;;  %v1050_v16 = vmul.f32 0.5, %v1039_v9  ;;  %v2874_v8 = vmul.f32 %v2817_v48, %v2815_v47 }
 0x346   : > { %v1028_v18 = vpop.f32.mrb[2].mxu0  ;;  %v1043_v19 = vpop.f32.mrb[2].mxu1 }
 0x347   : > { %2116 = vtanh.f32 %v1047_v15  ;;  %v1029_v21 = vadd.f32 %v1028_v18, %v2782_v0  ;;  %v1044_v23 = vadd.f32 %v1043_v19, %v2782_v0  ;;  %v1873_v24 = vpop.f32.mrb[3].mxu0  ;;  %v1882_v26 = vpop.f32.mrb[3].mxu1  ;;  %v1190_v15 = vsub.f32 1.0, %v2829_v53 }
 0x348   : > { %2118 = vtanh.f32 %v1050_v16  ;;  %v1227_v16 = vsub.f32 %v2839_v59, %v2829_v53  ;;  %v2890_v19 = vmul.f32 %v2851_v62, %v2773_v54 }
 0x349   : > { %2120 = vpow2.f32 %v1167_v14  ;;  %v1048_v31 = vmul.f32 0.5, %v1029_v21  ;;  %v1051_v32 = vmul.f32 0.5, %v1044_v23  ;;  %v2895_v21 = vmul.f32 %v2851_v62, %v2812_v45 }
 0x34a   : > { %v1033_v37 = vpop.f32.mrb[4].mxu0 }
 0x34b   : > { %2122 = vtanh.f32 %v1048_v31  ;;  %v1876_v41 = vpop.f32.mrb[5].mxu0  ;;  %v1034_v61 = vadd.f32 %v1033_v37, %v2782_v0  ;;  %v2867_v0 = vmul.f32 %v2805_v42, %v2812_v45 }
 0x34c   : > { %2124 = vtanh.f32 %v1051_v32 }
 0x34d   : > { %2126 = vpow2.f32 %v1144_v22  ;;  %v1049_v13 = vmul.f32 0.5, %v1034_v61 }
 0x34e   : > { %2128 = vpow2.f32 %v1163_v34 }
 0x34f   : > { %2130 = vtanh.f32 %v1049_v13 }
 0x351   : > { %v2117_v3 = vpop.eup %2116 }
 0x352   : > { %v2119_v5 = vpop.eup %2118  ;;  %v1057_v6 = vadd.f32 1.0, %v2117_v3 }
 0x353   : > { %v2877_v9 = vpop.eup %2120  ;;  %v1060_v11 = vadd.f32 1.0, %v2119_v5 }
 0x354   : > { %v1062_v14 = vmul.f32 0.5, %v1057_v6 }
 0x355   : > { %v2123_v18 = vpop.eup %2122  ;;  %v1065_v51 = vmul.f32 0.5, %v1060_v11 }
 0x356   : > { %v2125_v23 = vpop.eup %2124  ;;  %v1071_v24 = vmul.f32 %v2820_v49, %v1062_v14  ;;  %v1058_v26 = vadd.f32 1.0, %v2123_v18 }
 0x357   : > { %v2901_v30 = vpop.eup %2126  ;;  %v1074_v54 = vmul.f32 %v2820_v49, %v1065_v51  ;;  %v1061_v22 = vadd.f32 1.0, %v2125_v23 }
 0x358   : > { %v2905_v32 = vpop.eup %2128  ;;  %v1182_v33 = vmul.f32 %v2824_v50, %v1071_v24  ;;  %v1210_v34 = vsub.f32 %v1071_v24, %v2827_v52  ;;  %v1262_v36 = vmul.f32 %v2834_v57, %v1071_v24  ;;  %v1063_v37 = vmul.f32 0.5, %v1058_v26 }
 0x359   : > { %v1185_v39 = vmul.f32 %v2824_v50, %v1074_v54  ;;  %v1213_v40 = vsub.f32 %v1074_v54, %v2827_v52  ;;  %v1265_v41 = vmul.f32 %v2834_v57, %v1074_v54  ;;  %v1066_v53 = vmul.f32 0.5, %v1061_v22 }
 0x35a   : > { %v1192_v59 = vmul.f32 %v1187_v63, %v1182_v33  ;;  %v1219_v61 = vmul.f32 %v2832_v56, %v1210_v34  ;;  %v1234_v3 = vsub.f32 0.0, %v1210_v34  ;;  %v1272_v5 = vmul.f32 %v1267_v35, %v1262_v36 }
 0x35b   : > { %v1195_v6 = vmul.f32 %v1190_v15, %v1185_v39  ;;  %v1222_v11 = vmul.f32 %v2832_v56, %v1213_v40  ;;  %v1237_v13 = vsub.f32 0.0, %v1213_v40  ;;  %v1275_v14 = vmul.f32 %v1270_v20, %v1265_v41 }
 0x35c   : > { %v1197_v18 = vadd.f32 %v1192_v59, %v1173_v38  ;;  %v1229_v51 = vmul.f32 %v1224_v1, %v1219_v61  ;;  %v1244_v23 = vmul.f32 %v1239_v25, %v1234_v3  ;;  %v1277_v26 = vadd.f32 %v1272_v5, %v1253_v43 }
 0x35d   : > { %v1200_v31 = vadd.f32 %v1195_v6, %v1176_v12  ;;  %v1232_v29 = vmul.f32 %v1227_v16, %v1222_v11  ;;  %v1247_v27 = vmul.f32 %v1242_v10, %v1237_v13  ;;  %v1280_v7 = vadd.f32 %v1275_v14, %v1256_v17  ;;  %v2131_v10 = vpop.eup %2130 }
 0x35e   : > { %v1282_v46 = vadd.f32 %v1277_v26, %v1229_v51  ;;  %v1287_v22 = vsub.f32 %v1244_v23, %v1229_v51  ;;  %v1306_v63 = vmax.f32 %v1197_v18, 0.0  ;;  %v1072_v33 = vmul.f32 %v2820_v49, %v1063_v37 }
 0x35f   : > { %v1285_v35 = vadd.f32 %v1280_v7, %v1232_v29  ;;  %v1290_v15 = vsub.f32 %v1247_v27, %v1232_v29  ;;  %v1309_v34 = vmax.f32 %v1200_v31, 0.0  ;;  %v2917_v36 = vmul.f32 %v2820_v49, %v1066_v53 }
 0x360   : > { %v1296_v25 = vmul.f32 %v2837_v58, %v1287_v22  ;;  %v1320_v38 = vmul.f32 %v2844_v55, %v1306_v63  ;;  %v1339_v1 = vmul.f32 %v2848_v60, %v1306_v63  ;;  %v1183_v43 = vmul.f32 %v2824_v50, %v1072_v33 }
 0x361   : > { %v1299_v12 = vmul.f32 %v2837_v58, %v1290_v15  ;;  %v1323_v7 = vmul.f32 %v2844_v55, %v1309_v34  ;;  %v1342_v16 = vmul.f32 %v2848_v60, %v1309_v34  ;;  %v1211_v17 = vsub.f32 %v1072_v33, %v2827_v52 }
 0x362   : > { %v1301_v20 = vadd.f32 %v1296_v25, %v1282_v46  ;;  %1325 = vst [vmem:[%s2631_s17] sm:$0xff] %v1320_v38  ;;  %v1344_v27 = vsub.f32 %v1071_v24, %v1339_v1  ;;  %v1193_v29 = vmul.f32 %v1188_v4, %v1183_v43  ;;  %v1263_v31 = vmul.f32 %v2834_v57, %v1072_v33 }
 0x363   : > { %v1304_v37 = vadd.f32 %v1299_v12, %v1285_v35  ;;  %1328 = vst [vmem:[%s2631_s17 + $0x18] sm:$0xff] %v1323_v7  ;;  %v1347_v39 = vsub.f32 %v1074_v54, %v1342_v16  ;;  %v1220_v40 = vmul.f32 %v2832_v56, %v1211_v17  ;;  %v1235_v41 = vsub.f32 0.0, %v1211_v17 }
 0x364   : > { %v1311_v53 = vmax.f32 %v1301_v20, 0.0  ;;  %1349 = vst [vmem:[%s2635_s6] sm:$0xff] %v1344_v27  ;;  %v1198_v46 = vadd.f32 %v1193_v29, %v2867_v0  ;;  %v3270_v59 = vsub.f32 1.0, %v2817_v48  ;;  %v1186_v4 = vmul.f32 %v2824_v50, %v2917_v36 }
 0x365   : > { %v1314_v61 = vmax.f32 %v1304_v37, 0.0  ;;  %1352 = vst [vmem:[%s2635_s6 + $0x18] sm:$0xff] %v1347_v39  ;;  %v3271_v3 = vsub.f32 %v2817_v48, %v2805_v42  ;;  %v1245_v5 = vmul.f32 %v2862_v28, %v1235_v41  ;;  %v1214_v6 = vsub.f32 %v2917_v36, %v2827_v52 }
 0x366   : > { %v1273_v24 = vmul.f32 %v3270_v59, %v1263_v31  ;;  %1330 = vst [vmem:[%s2633_s4] sm:$0xff] %v1311_v53  ;;  %v1358_v0 = vmul.f32 %v2809_v44, %v1311_v53  ;;  %v1307_v13 = vmax.f32 %v1198_v46, 0.0  ;;  %v3272_v14 = vsub.f32 1.0, %v2851_v62 }
 0x367   : > { %v1230_v54 = vmul.f32 %v3271_v3, %v1220_v40  ;;  %1333 = vst [vmem:[%s2633_s4 + $0x18] sm:$0xff] %v1314_v61  ;;  %v1361_v42 = vmul.f32 %v2809_v44, %v1314_v61  ;;  %v1223_v28 = vmul.f32 %v2832_v56, %v1214_v6  ;;  %v1238_v51 = vsub.f32 0.0, %v1214_v6 }
 0x368   : > { %v1278_v11 = vadd.f32 %v1273_v24, %v2874_v8  ;;  %v1196_v18 = vmul.f32 %v3272_v14, %v1186_v4  ;;  %v1363_v23 = vsub.f32 %v1339_v1, %v1358_v0  ;;  %v1321_v22 = vmul.f32 %v2844_v55, %v1307_v13 }
 0x369   : > { %v1288_v48 = vsub.f32 %v1245_v5, %v1230_v54  ;;  %v1340_v8 = vmul.f32 %v2848_v60, %v1307_v13  ;;  %v1366_v63 = vsub.f32 %v1342_v16, %v1361_v42  ;;  %v3273_v34 = vsub.f32 %v2877_v9, %v2851_v62 }
 0x36a   : > { %v1283_v26 = vadd.f32 %v1278_v11, %v1230_v54  ;;  %v1201_v15 = vadd.f32 %v1196_v18, %v2895_v21  ;;  %1368 = vst [vmem:[%s2637_s12] sm:$0xff] %v1363_v23  ;;  %1326 = vst [vmem:[%s2631_s17 + $0x8] sm:$0xff] %v1321_v22  ;;  %v1248_v1 = vmul.f32 %v2890_v19, %v1238_v51  ;;  %v1059_v12 = vadd.f32 1.0, %v2131_v10 }
 0x36b   : > { %v1297_v35 = vmul.f32 %v2837_v58, %v1288_v48  ;;  %v1233_v25 = vmul.f32 %v3273_v34, %v1223_v28  ;;  %v1345_v38 = vsub.f32 %v1072_v33, %v1340_v8  ;;  %v1266_v43 = vmul.f32 %v2834_v57, %v2917_v36  ;;  %1371 = vst [vmem:[%s2637_s12 + $0x18] sm:$0xff] %v1366_v63 }
 0x36c   : > { %v1310_v16 = vmax.f32 %v1201_v15, 0.0  ;;  %v1257_v62 = vmul.f32 %v2877_v9, %v2815_v47  ;;  %v3274_v21 = vsub.f32 1.0, %v2877_v9  ;;  %v1064_v33 = vmul.f32 0.5, %v1059_v12 }
 0x36d   : > { %v1302_v7 = vadd.f32 %v1297_v35, %v1283_v26  ;;  %1350 = vst [vmem:[%s2635_s6 + $0x8] sm:$0xff] %v1345_v38  ;;  %v1291_v20 = vsub.f32 %v1248_v1, %v1233_v25  ;;  %v1241_v9 = vmul.f32 %v2901_v30, %v2784_v2  ;;  %v1189_v41 = vsub.f32 1.0, %v2901_v30 }
 0x36e   : > { %v1276_v17 = vmul.f32 %v3274_v21, %v1266_v43  ;;  %v1324_v19 = vmul.f32 %v2844_v55, %v1310_v16  ;;  %v1343_v29 = vmul.f32 %v2848_v60, %v1310_v16  ;;  %v2977_v37 = vmul.f32 %v2820_v49, %v1064_v33 }
 0x36f   : > { %v1312_v27 = vmax.f32 %v1302_v7, 0.0  ;;  %v1300_v31 = vmul.f32 %v2837_v58, %v1291_v20  ;;  %v1175_v24 = vmul.f32 %v2901_v30, %v2812_v45  ;;  %v1269_v4 = vsub.f32 1.0, %v2905_v32 }
 0x370   : > { %v1281_v10 = vadd.f32 %v1276_v17, %v1257_v62  ;;  %1329 = vst [vmem:[%s2631_s17 + $0x20] sm:$0xff] %v1324_v19  ;;  %v1348_v40 = vsub.f32 %v2917_v36, %v1343_v29  ;;  %v1184_v46 = vmul.f32 %v2824_v50, %v2977_v37  ;;  %v1212_v49 = vsub.f32 %v2977_v37, %v2827_v52 }
 0x371   : > { %1331 = vst [vmem:[%s2633_s4 + $0x8] sm:$0xff] %v1312_v27  ;;  %v1359_v39 = vmul.f32 %v2809_v44, %v1312_v27  ;;  %v1264_v2 = vmul.f32 %v2834_v57, %v2977_v37  ;;  %v1226_v36 = vsub.f32 %v2905_v32, %v2901_v30  ;;  %v1255_v57 = vmul.f32 %v2905_v32, %v2815_v47 }
 0x372   : > { %v1286_v53 = vadd.f32 %v1281_v10, %v1233_v25  ;;  %1353 = vst [vmem:[%s2635_s6 + $0x20] sm:$0xff] %v1348_v40  ;;  %v1194_v61 = vmul.f32 %v1189_v41, %v1184_v46  ;;  %v1221_v52 = vmul.f32 %v2832_v56, %v1212_v49  ;;  %v1236_v3 = vsub.f32 0.0, %v1212_v49 }
 0x373   : > { %v1364_v59 = vsub.f32 %v1340_v8, %v1359_v39  ;;  %v1274_v54 = vmul.f32 %v1269_v4, %v1264_v2 }
 0x374   : > { %v1305_v50 = vadd.f32 %v1300_v31, %v1286_v53  ;;  %v1199_v5 = vadd.f32 %v1194_v61, %v1175_v24  ;;  %v1231_v6 = vmul.f32 %v1226_v36, %v1221_v52  ;;  %v1246_v30 = vmul.f32 %v1241_v9, %v1236_v3 }
 0x375   : > { %1369 = vst [vmem:[%s2637_s12 + $0x8] sm:$0xff] %v1364_v59  ;;  %v1279_v0 = vadd.f32 %v1274_v54, %v1255_v57 }
 0x376   : > { %v1315_v45 = vmax.f32 %v1305_v50, 0.0  ;;  %v1289_v11 = vsub.f32 %v1246_v30, %v1231_v6  ;;  %v1308_v47 = vmax.f32 %v1199_v5, 0.0 }
 0x377   : > { %v1284_v32 = vadd.f32 %v1279_v0, %v1231_v6 }
 0x378   : > { %1334 = vst [vmem:[%s2633_s4 + $0x20] sm:$0xff] %v1315_v45  ;;  %v1362_v56 = vmul.f32 %v2809_v44, %v1315_v45  ;;  %v1298_v14 = vmul.f32 %v2837_v58, %v1289_v11  ;;  %v1322_v18 = vmul.f32 %v2844_v55, %v1308_v47  ;;  %v3012_v42 = vmul.f32 %v2848_v60, %v1308_v47 }
 0x37a   : > { %v1367_v13 = vsub.f32 %v1343_v29, %v1362_v56  ;;  %v1303_v58 = vadd.f32 %v1298_v14, %v1284_v32  ;;  %1327 = vst [vmem:[%s2631_s17 + $0x10] sm:$0xff] %v1322_v18  ;;  %v1346_v55 = vsub.f32 %v2977_v37, %v3012_v42 }
 0x37c   : > { %1372 = vst [vmem:[%s2637_s12 + $0x20] sm:$0xff] %v1367_v13 }
 0x37d   : > { %2173 = shalt.err (!%p2170_p8)
}
 0x37e   : > { %s2174_s17 = scalar_lea.hbm %s3018_s29, 640  ;;  %s2178_s19 = scalar_lea.hbm %s3275_s10, 9600 }
 0x37f   : > { %p2175_p3 = scmp.ne.s32.totalorder %s3018_s29, %s2174_s17  ;;  %p2179_p1 = scmp.lt.u32.totalorder %s3018_s29, %s3275_s10 }
 0x380   : > { %p2180_p2 = scmp.lt.u32.totalorder %s2178_s19, %s2174_s17  ;;  %p2182_p7 = scmp.lt.u32.totalorder %s2174_s17, %s3018_s29 }
 0x381   : > { %p2176_p10 = pnand %p2175_p3, %p3277_p9 }
 0x382   : > { %p2181_p5 = por %p2180_p2, %p2179_p1 }
 0x383   : > { %p2177_p13 = pneg %p2176_p10 }
 0x384   : > { %p2183_p11 = por %p2182_p7, %p2181_p5 }
 0x386   : > { %p2184_p12 = pnand %p2183_p11, %p2177_p13 }
 0x388   : > { %2187 = shalt.err (!%p2184_p12)
}
 0x389   : > { %s3233_s25 = smov 128   ;;  %s3235_s20 = smov 384   ;;  %v1313_v60 = vmax.f32 %v1303_v58, 0.0  ;;  %1351 = vst [vmem:[%s2635_s6 + $0x10] sm:$0xff] %v1346_v55 }
 0x38a   : > { %s3237_s30 = smov 8   ;;  %s3278_s23 = sshll.u32 %s2633_s4, 4  ;;  %s3065_s23 = int_to_ptr.vmem [resolvable:$true] %s3278_s23 }
 0x38b   : > { %1975 = dma.vmem_to_hbm [thread:$0]  (%p3277_p9), %s3020_s22, 640, %s3018_s29, %s1374_s9, %s3233_s25, %s3235_s20, %s3237_s30   ;;  %v1360_v48 = vmul.f32 %v2809_v44, %v1313_v60 }
 0x38c   : > { %s3279_s19 = sld [smem:[#allocation32_spill]]  ;;  %s3281_s1 = sshll.u32 %s2635_s6, 4  ;;  %1332 = vst [vmem:[%s2633_s4 + $0x10] sm:$0xff] %v1313_v60  ;;  %s3075_s1 = int_to_ptr.vmem [resolvable:$true] %s3281_s1 }
 0x38d   : > { %s3282_s9 = sld [smem:[#allocation33_spill]]  ;;  %s3283_s20 = sshll.u32 %s2637_s12, 4  ;;  %s3087_s20 = int_to_ptr.vmem [resolvable:$true] %s3283_s20 }
 0x38e   : > { %s3284_s8 = sand.u32 1, %s2496_s27   ;;  %s2188_s30 = scalar_lea.vmem %s3065_s23, 640 }
 0x38f   : > { %s3091_s17 = scalar_lea.sflag [#allocation10], %s3284_s8  ;;  %p2189_p0 = scmp.ne.s32.totalorder %s3065_s23, %s2188_s30 }
 0x390   : > { %s2382_s6 = smov [#allocation9]  }
 0x391   : > { %p2190_p4 = pnand %p2189_p0, %p3277_p9  ;;  %s2192_s4 = sshll.u32 %s2382_s6, 4  ;;  %s2193_s4 = int_to_ptr.vmem [resolvable:$false] %s2192_s4 }
 0x392   : > { %s3280_s28 = smov %s3279_s19  ;;  %s3071_s0 = scalar_lea.hbm %s3279_s19, %s3004_s15 }
 0x393   : > { %s3083_s25 = scalar_lea.hbm %s3282_s9, %s3004_s15  ;;  %p2191_p6 = pneg %p2190_p4 }
 0x394   : > { %s2194_s19 = scalar_lea.vmem %s2193_s4, 1280  ;;  %p2195_p8 = scmp.lt.s32.totalorder %s3065_s23, %s2193_s4 }
 0x395   : > { %p2196_p3 = scmp.lt.s32.totalorder %s2194_s19, %s2188_s30 }
 0x397   : > { %p2197_p10 = por %p2196_p3, %p2195_p8 }
 0x399   : > { %p2198_p13 = pnand %p2197_p10, %p2191_p6 }
 0x39b   : > { %2201 = shalt.err (!%p2198_p13)
}
 0x39c   : > { %s2202_s27 = scalar_lea.hbm %s3026_s13, 640  ;;  %s2206_s29 = scalar_lea.hbm %s3276_s16, 9600 }
 0x39d   : > { %p2203_p1 = scmp.ne.s32.totalorder %s3026_s13, %s2202_s27  ;;  %p2207_p7 = scmp.lt.u32.totalorder %s3026_s13, %s3276_s16 }
 0x39e   : > { %p2208_p11 = scmp.lt.u32.totalorder %s2206_s29, %s2202_s27  ;;  %p2210_p0 = scmp.lt.u32.totalorder %s2202_s27, %s3026_s13 }
 0x39f   : > { %p2204_p2 = pnand %p2203_p1, %p3277_p9 }
 0x3a0   : > { %p2209_p12 = por %p2208_p11, %p2207_p7 }
 0x3a1   : > { %p2205_p5 = pneg %p2204_p2 }
 0x3a2   : > { %p2211_p4 = por %p2210_p0, %p2209_p12 }
 0x3a4   : > { %p2212_p6 = pnand %p2211_p4, %p2205_p5 }
 0x3a6   : > { %2215 = shalt.err (!%p2212_p6)
}
 0x3a7   : > { %s3285_s30 = smov 8   ;;  %s3286_s4 = smov 384   ;;  %v1365_v44 = vsub.f32 %v3012_v42, %v1360_v48 }
 0x3a8   : > { %s3287_s19 = smov 128   ;;  %s2216_s15 = scalar_lea.vmem %s3075_s1, 640 }
 0x3a9   : > { %1976 = dma.vmem_to_hbm [thread:$0]  (%p3277_p9), %s3065_s23, 640, %s3026_s13, %s3091_s17, %s3287_s19, %s3286_s4, %s3285_s30  }
 0x3aa   : > { %p2217_p8 = scmp.ne.s32.totalorder %s3075_s1, %s2216_s15  ;;  %s2383_s27 = smov [#allocation11]  }
 0x3ab   : > { %s2220_s22 = sshll.u32 %s2383_s27, 4  ;;  %s2221_s22 = int_to_ptr.vmem [resolvable:$false] %s2220_s22 }
 0x3ac   : > { %p2218_p3 = pnand %p2217_p8, %p3277_p9  ;;  %s2222_s29 = scalar_lea.vmem %s2221_s22, 1280 }
 0x3ad   : > { %p2223_p13 = scmp.lt.s32.totalorder %s3075_s1, %s2221_s22  ;;  %p2224_p1 = scmp.lt.s32.totalorder %s2222_s29, %s2216_s15 }
 0x3ae   : > { %p2219_p10 = pneg %p2218_p3 }
 0x3af   : > { %p2225_p2 = por %p2224_p1, %p2223_p13 }
 0x3b1   : > { %p2226_p5 = pnand %p2225_p2, %p2219_p10 }
 0x3b3   : > { %2229 = shalt.err (!%p2226_p5)
}
 0x3b4   : > { %s2230_s13 = scalar_lea.hbm %s3071_s0, 640  ;;  %s2234_s6 = scalar_lea.hbm %s3280_s28, 9600 }
 0x3b5   : > { %p2231_p7 = scmp.ne.s32.totalorder %s3071_s0, %s2230_s13  ;;  %p2235_p0 = scmp.lt.u32.totalorder %s3071_s0, %s3280_s28 }
 0x3b6   : > { %p2236_p4 = scmp.lt.u32.totalorder %s2234_s6, %s2230_s13  ;;  %p2238_p8 = scmp.lt.u32.totalorder %s2230_s13, %s3071_s0 }
 0x3b7   : > { %p2232_p11 = pnand %p2231_p7, %p3277_p9 }
 0x3b8   : > { %p2237_p6 = por %p2236_p4, %p2235_p0 }
 0x3b9   : > { %p2233_p12 = pneg %p2232_p11 }
 0x3ba   : > { %p2239_p3 = por %p2238_p8, %p2237_p6 }
 0x3bc   : > { %p2240_p10 = pnand %p2239_p3, %p2233_p12 }
 0x3be   : > { %2243 = shalt.err (!%p2240_p10)
}
 0x3bf   : > { %1977 = dma.vmem_to_hbm [thread:$0]  (%p3277_p9), %s3075_s1, 640, %s3071_s0, %s3091_s17, %s3287_s19, %s3286_s4, %s3285_s30  }
 0x3c0   : > { %1370 = vst [vmem:[%s2637_s12 + $0x10] sm:$0xff] %v1365_v44  ;;  %s1389_s15 = scalar_lea.sflag [#allocation13], %s2612_s14  ;;  %s2244_s29 = scalar_lea.vmem %s3087_s20, 640 }
 0x3c1   : > { %p2245_p13 = scmp.ne.s32.totalorder %s3087_s20, %s2244_s29  ;;  %s2384_s13 = smov [#allocation12]  }
 0x3c2   : > { %s2248_s23 = sshll.u32 %s2384_s13, 4  ;;  %s2249_s23 = int_to_ptr.vmem [resolvable:$false] %s2248_s23 }
 0x3c3   : > { %p2246_p1 = pnand %p2245_p13, %p3277_p9  ;;  %s2250_s8 = scalar_lea.vmem %s2249_s23, 1280 }
 0x3c4   : > { %p2251_p5 = scmp.lt.s32.totalorder %s3087_s20, %s2249_s23  ;;  %p2252_p7 = scmp.lt.s32.totalorder %s2250_s8, %s2244_s29 }
 0x3c5   : > { %p2247_p2 = pneg %p2246_p1 }
 0x3c6   : > { %p2253_p11 = por %p2252_p7, %p2251_p5 }
 0x3c8   : > { %p2254_p12 = pnand %p2253_p11, %p2247_p2 }
 0x3ca   : > { %2257 = shalt.err (!%p2254_p12)
}
 0x3cb   : > { %s2258_s0 = scalar_lea.hbm %s3083_s25, 640  ;;  %s2262_s17 = scalar_lea.hbm %s3282_s9, 9600 }
 0x3cc   : > { %p2259_p0 = scmp.ne.s32.totalorder %s3083_s25, %s2258_s0  ;;  %p2263_p8 = scmp.lt.u32.totalorder %s3083_s25, %s3282_s9 }
 0x3cd   : > { %p2264_p3 = scmp.lt.u32.totalorder %s2262_s17, %s2258_s0  ;;  %p2266_p13 = scmp.lt.u32.totalorder %s2258_s0, %s3083_s25 }
 0x3ce   : > { %p2260_p4 = pnand %p2259_p0, %p3277_p9 }
 0x3cf   : > { %p2265_p10 = por %p2264_p3, %p2263_p8 }
 0x3d0   : > { %p2261_p6 = pneg %p2260_p4 }
 0x3d1   : > { %p2267_p1 = por %p2266_p13, %p2265_p10 }
 0x3d3   : > { %p2268_p2 = pnand %p2267_p1, %p2261_p6 }
 0x3d5   : > { %2271 = shalt.err (!%p2268_p2)
}
 0x3d6   : > { %1978 = dma.vmem_to_hbm [thread:$0]  (%p3277_p9), %s3087_s20, 640, %s3083_s25, %s1389_s15, %s3287_s19, %s3286_s4, %s3285_s30  }
 0x3d7 PF: > { %s3288_s22 = sld [smem:[#allocation18_spill]]  ;;  %s3289_s29 = sld [smem:[#allocation25_spill]] }
 0x3d8   : > { %p2006_p5 = scmp.ge.s32.totalorder %s2366_s26, 2 }
 0x3dd   : > { %s1473_s13 = sand.u32 1, %s3288_s22   ;;  %p3290_p7 = scmp.ne.s32.totalorder %s3289_s29, 0 }
 0x3de   : > { %s1474_s23 = scalar_lea.sflag [#allocation5], %s1473_s13 }
 0x3df   : > { %p1988_p11 = pnand %p2006_p5, %p3290_p7 }
 0x3e1   : > { %2317 = dma.done.wait (!%p1988_p11), %s1474_s23, 640  }
 0x3e2   : > { %2319 = vsyncadd (!%p1988_p11), %s1474_s23, 4294966656  ;;  %s3291_s11 = sadd.s32 4294967294, %s2366_s26  }
 0x3e3   : > { %s1482_s8 = sand.u32 1, %s3291_s11  }
 0x3e4   : > { %s1483_s0 = scalar_lea.sflag [#allocation10], %s1482_s8 }
 0x3e5   : > { %2321 = dma.done.wait (!%p1988_p11), %s1483_s0, 1280  }
 0x3e6   : > { %2323 = vsyncadd (!%p1988_p11), %s1483_s0, 4294966016  ;;  %s1501_s14 = scalar_lea.sflag [#allocation13], %s1473_s13 }
 0x3e7   : > { %2325 = dma.done.wait (!%p1988_p11), %s1501_s14, 640  }
 0x3e8   : > { %2327 = vsyncadd (!%p1988_p11), %s1501_s14, 4294966656  ;;  %s32_s26 = sadd.s32 1, %s2366_s26   ;;  %s3292_s25 = sld [smem:[#allocation19_spill]] }
 0x3e9   : > { %p29_p9 = scmp.ge.s32.totalorder %s32_s26, 17   ;;  %s3293_s19 = sld [smem:[#allocation24_spill]] }
 0x3ea   : > { %s3294_s30 = sld [smem:[#allocation23_spill]]  ;;  %s3295_s23 = sld [smem:[#allocation20_spill]] }
 0x3eb   : > { %s3296_s4 = sld [smem:[#allocation21_spill]]  ;;  %s3297_s15 = sld [smem:[#allocation22_spill]] }
 0x3ec   : > { %s3298_s17 = smov %s2334_s18  ;;  %s3300_s20 = smov %s2346_s21 }
 0x3ed   : > { %s3302_s22 = smov %s2358_s24  ;;  %31 = sbr.rel (!%p29_p9) target bundleno = 20 (0x14), region = 240 }
 0x3ee   : > { %s3299_s18 = smov %s3292_s25 }
 0x3f0   : > { %s3301_s21 = smov %s3294_s30 }
 0x3f1   : > { %s3303_s24 = smov %s3296_s4  ;;  %s3304_s25 = smov %s3297_s15 }
 0x3f4   :  { %1506 = vsyncpa [#allocation4], 1 }
 0x3f5   :  { %1508 = vsyncpa [#allocation4 + $0x1], 1 }
 0x3f6   :  { %1509 = vsyncpa [#allocation5], 1 }
 0x3f7   :  { %1511 = vsyncpa [#allocation5 + $0x1], 1 }
 0x3f8   :  { %1512 = vsyncpa [#allocation10], 1 }
 0x3f9   :  { %1514 = vsyncpa [#allocation10 + $0x1], 1 }
 0x3fa   :  { %1515 = vsyncpa [#allocation13], 1 }
 0x3fb   :  { %1517 = vsyncpa [#allocation13 + $0x1], 1 }

</bundles_post_ra>
